<compile_context>
chip_gen: v6e
topology: v6e:2x2x1
jax: 0.10.0
libtpu: 0.0.40
codegen_flags: <defaults>
</compile_context>

<pallas_src>
import functools

import numpy as np
import jax
import jax.numpy as jnp
from jax.experimental import pallas as pl
from jax.experimental.pallas import tpu as pltpu


# ---------------------------------------------------------------------------
# Fused kernel: 1x1 conv (VPU MACs) + channel softmax + bilinear resize.
# One grid step = one batch element, all K output channels.
# ---------------------------------------------------------------------------
def _seg_head_kernel(x_ref, w_ref, r_ref, ct_ref, border_ref, o_ref):
    # x_ref:      (1, C, H, W)   VMEM  input feature maps for this batch element
    # w_ref:      (K, C)         SMEM  1x1-conv weights (read as scalars)
    # r_ref:      (Ho, H)        VMEM  row-interp matrix restricted to interior rows
    # ct_ref:     (W, Wo)        VMEM  col-interp matrix (transposed), interior cols
    # border_ref: (Ho, Wo)       VMEM  constant contribution of the 1/K pad border
    # o_ref:      (1, K, Ho, Wo) VMEM  output block
    K, C = w_ref.shape

    # --- 1x1 conv: logits[k] = sum_c w[k,c] * x[c]  (unrolled VPU MACs) ------
    chans = [x_ref[0, c] for c in range(C)]              # each (H, W)
    logits = []
    for k in range(K):
        acc = w_ref[k, 0] * chans[0]
        for c in range(1, C):
            acc = acc + w_ref[k, c] * chans[c]
        logits.append(acc)

    # --- Softmax2d over the K channel maps (unrolled VPU max/add, EUP exp) ---
    m = logits[0]
    for k in range(1, K):
        m = jnp.maximum(m, logits[k])
    exps = [jnp.exp(l - m) for l in logits]
    s = exps[0]
    for k in range(1, K):
        s = s + exps[k]
    inv_s = 1.0 / s          # exact divide: approx reciprocal breaks 1e-5 tolerance

    # --- Bilinear resize: out_k = R @ P_k @ Ct + border ----------------------
    r = r_ref[...]                                       # (Ho, H)
    ct = ct_ref[...]                                     # (W, Wo)
    border = border_ref[...]                             # (Ho, Wo)
    for k in range(K):
        p_k = exps[k] * inv_s                            # (H, W) interior probs
        tmp = jnp.dot(p_k, ct, preferred_element_type=jnp.float32)       # (H, Wo)
        o_ref[0, k] = jnp.dot(r, tmp, preferred_element_type=jnp.float32) + border


# ---------------------------------------------------------------------------
# Host-side, shape-only constants (PyTorch bilinear, align_corners=False).
# ---------------------------------------------------------------------------
@functools.lru_cache(maxsize=None)
def _bilinear_matrix_np(in_size, out_size):
    scale = in_size / out_size
    d = np.arange(out_size, dtype=np.float32)
    src = np.maximum(scale * (d + 0.5) - 0.5, 0.0).astype(np.float32)
    i0 = np.minimum(np.floor(src).astype(np.int32), in_size - 1)
    i1 = np.minimum(i0 + 1, in_size - 1)
    lam = (src - i0.astype(np.float32)).astype(np.float32)
    w = np.zeros((out_size, in_size), dtype=np.float32)
    rows = np.arange(out_size)
    np.add.at(w, (rows, i0), (1.0 - lam).astype(np.float32))
    np.add.at(w, (rows, i1), lam)
    return w


def segmentation_head_forward(x_nchw, conv_w, input_sz=(200, 200)):
    """Forward pass equivalent to SegmentationNet10aHead.forward (num_sub_heads=1).

    x_nchw:  (N, C, H, W) float32
    conv_w:  (K, C) float32  (PyTorch Conv2d weight (K, C, 1, 1) squeezed)
    returns: list of one array (N, K, 200, 200) float32
    """
    N, C, H, W = x_nchw.shape
    K = conv_w.shape[0]
    Hp, Wp = H + 2, W + 2           # Conv2d(1x1, padding=1) grows the map by 2
    Ho, Wo = input_sz

    r_full = _bilinear_matrix_np(Hp, Ho)                              # (Ho, Hp)
    c_full = _bilinear_matrix_np(Wp, Wo)                              # (Wo, Wp)
    r_in = jnp.asarray(np.ascontiguousarray(r_full[:, 1:Hp - 1]))     # (Ho, H)
    ct_in = jnp.asarray(np.ascontiguousarray(c_full[:, 1:Wp - 1].T))  # (W, Wo)
    # Border logits are exactly 0 (no bias) -> softmax is exactly 1/K there, so
    # the border's contribution to the bilinear output is a constant map.
    b_mask = np.ones((Hp, Wp), np.float32)
    b_mask[1:-1, 1:-1] = 0.0
    border = jnp.asarray((r_full @ b_mask @ c_full.T) * (1.0 / K))    # (Ho, Wo)

    out = pl.pallas_call(
        _seg_head_kernel,
        out_shape=jax.ShapeDtypeStruct((N, K, Ho, Wo), jnp.float32),
        grid=(N,),
        in_specs=[
            pl.BlockSpec((1, C, H, W), lambda n: (n, 0, 0, 0)),
            pl.BlockSpec(memory_space=pltpu.MemorySpace.SMEM),        # conv weights
            pl.BlockSpec((Ho, H), lambda n: (0, 0)),
            pl.BlockSpec((W, Wo), lambda n: (0, 0)),
            pl.BlockSpec((Ho, Wo), lambda n: (0, 0)),
        ],
        out_specs=pl.BlockSpec((1, K, Ho, Wo), lambda n: (n, 0, 0, 0)),
        compiler_params=pltpu.CompilerParams(
            dimension_semantics=("parallel",)),
    )(x_nchw.astype(jnp.float32), conv_w.astype(jnp.float32), r_in, ct_in, border)
    return [out]                                         # num_sub_heads == 1


# ---------------------------------------------------------------------------
# Pure-JAX reference (same math, no Pallas) for a correctness check.
# ---------------------------------------------------------------------------
def reference_forward(x_nchw, conv_w, input_sz=(200, 200)):
    N, C, H, W = x_nchw.shape
    logits = jnp.einsum('nchw,kc->nkhw', x_nchw, conv_w)
    logits = jnp.pad(logits, ((0, 0), (0, 0), (1, 1), (1, 1)))
    p = jax.nn.softmax(logits, axis=1)
    r = jnp.asarray(_bilinear_matrix_np(H + 2, input_sz[0]))          # (Ho, Hp)
    c = jnp.asarray(_bilinear_matrix_np(W + 2, input_sz[1]))          # (Wo, Wp)
    return jnp.einsum('oh,nkhw,mw->nkom', r, p, c)


if __name__ == "__main__":
    # cfg mirrors the PyTorch module: num_features = cfg[-1][0]
    cfg = [(4, 1)]
    num_features = cfg[-1][0]      # C = 4
    output_k = 4                   # K
    N, H, W = 2, 16, 16

    key = jax.random.PRNGKey(0)
    kx, kw = jax.random.split(key)
    x = jax.random.normal(kx, (N, num_features, H, W), dtype=jnp.float32)
    conv_w = (jax.random.normal(kw, (output_k, num_features), dtype=jnp.float32)
              * 0.1)               # synthetic Conv2d weight (K,C,1,1) -> (K,C)

    results = segmentation_head_forward(x, conv_w)
    out = jax.block_until_ready(results[0])

    # sanity checks: shape, simplex structure, and match vs jnp reference
    assert out.shape == (N, output_k, 200, 200), out.shape
    chan_sum = jnp.sum(out, axis=1)            # bilinear interp of a simplex sums to 1
    assert jnp.allclose(chan_sum, 1.0, atol=1e-4)
    ref = jax.block_until_ready(reference_forward(x, conv_w))
    assert jnp.allclose(out, ref, atol=1e-5, rtol=1e-5)

    print("KERNEL_OK")
</pallas_src>

<mosaic_0001>
module attributes {stable_mosaic.version = 11 : i64} {
  func.func @_seg_head_kernel(%arg0: i32, %arg1: memref<1x4x16x16xf32, #tpu.memory_space<vmem>>, %arg2: memref<4x4xf32, #tpu.memory_space<smem>>, %arg3: memref<200x16xf32, #tpu.memory_space<vmem>>, %arg4: memref<16x200xf32, #tpu.memory_space<vmem>>, %arg5: memref<200x200xf32, #tpu.memory_space<vmem>>, %arg6: memref<1x4x200x200xf32, #tpu.memory_space<vmem>>) attributes {dimension_semantics = [#tpu.dimension_semantics<parallel>], iteration_bounds = array<i64: 2>, scalar_prefetch = 0 : i64, scratch_operands = 0 : i64, tpu.core_type = #tpu.core_type<tc>, window_params = [{transform_indices = @transform_0, window_bounds = array<i64: 1, 4, 16, 16>}, {transform_indices = @transform_1, window_bounds = array<i64: 4, 4>}, {pipeline_mode = #tpu.pipeline_mode<synchronous>, transform_indices = @transform_2, window_bounds = array<i64: 200, 16>}, {pipeline_mode = #tpu.pipeline_mode<synchronous>, transform_indices = @transform_3, window_bounds = array<i64: 16, 200>}, {pipeline_mode = #tpu.pipeline_mode<synchronous>, transform_indices = @transform_4, window_bounds = array<i64: 200, 200>}, {transform_indices = @transform_5, window_bounds = array<i64: 1, 4, 200, 200>}]} {
    %c0 = arith.constant 0 : index
    %c0_0 = arith.constant 0 : index
    %c0_1 = arith.constant 0 : index
    %c0_2 = arith.constant 0 : index
    %0 = vector.load %arg1[%c0, %c0_0, %c0_1, %c0_2] : memref<1x4x16x16xf32, #tpu.memory_space<vmem>>, vector<1x1x16x16xf32>
    %1 = vector.shape_cast %0 : vector<1x1x16x16xf32> to vector<16x16xf32>
    %c0_3 = arith.constant 0 : index
    %c1 = arith.constant 1 : index
    %c0_4 = arith.constant 0 : index
    %c0_5 = arith.constant 0 : index
    %2 = vector.load %arg1[%c0_3, %c1, %c0_4, %c0_5] : memref<1x4x16x16xf32, #tpu.memory_space<vmem>>, vector<1x1x16x16xf32>
    %3 = vector.shape_cast %2 : vector<1x1x16x16xf32> to vector<16x16xf32>
    %c0_6 = arith.constant 0 : index
    %c2 = arith.constant 2 : index
    %c0_7 = arith.constant 0 : index
    %c0_8 = arith.constant 0 : index
    %4 = vector.load %arg1[%c0_6, %c2, %c0_7, %c0_8] : memref<1x4x16x16xf32, #tpu.memory_space<vmem>>, vector<1x1x16x16xf32>
    %5 = vector.shape_cast %4 : vector<1x1x16x16xf32> to vector<16x16xf32>
    %c0_9 = arith.constant 0 : index
    %c3 = arith.constant 3 : index
    %c0_10 = arith.constant 0 : index
    %c0_11 = arith.constant 0 : index
    %6 = vector.load %arg1[%c0_9, %c3, %c0_10, %c0_11] : memref<1x4x16x16xf32, #tpu.memory_space<vmem>>, vector<1x1x16x16xf32>
    %7 = vector.shape_cast %6 : vector<1x1x16x16xf32> to vector<16x16xf32>
    %c0_12 = arith.constant 0 : index
    %c0_13 = arith.constant 0 : index
    %8 = memref.load %arg2[%c0_12, %c0_13] : memref<4x4xf32, #tpu.memory_space<smem>>
    %9 = vector.broadcast %8 : f32 to vector<16x16xf32>
    %10 = arith.mulf %9, %1 : vector<16x16xf32>
    %c0_14 = arith.constant 0 : index
    %c1_15 = arith.constant 1 : index
    %11 = memref.load %arg2[%c0_14, %c1_15] : memref<4x4xf32, #tpu.memory_space<smem>>
    %12 = vector.broadcast %11 : f32 to vector<16x16xf32>
    %13 = arith.mulf %12, %3 : vector<16x16xf32>
    %14 = arith.addf %10, %13 : vector<16x16xf32>
    %c0_16 = arith.constant 0 : index
    %c2_17 = arith.constant 2 : index
    %15 = memref.load %arg2[%c0_16, %c2_17] : memref<4x4xf32, #tpu.memory_space<smem>>
    %16 = vector.broadcast %15 : f32 to vector<16x16xf32>
    %17 = arith.mulf %16, %5 : vector<16x16xf32>
    %18 = arith.addf %14, %17 : vector<16x16xf32>
    %c0_18 = arith.constant 0 : index
    %c3_19 = arith.constant 3 : index
    %19 = memref.load %arg2[%c0_18, %c3_19] : memref<4x4xf32, #tpu.memory_space<smem>>
    %20 = vector.broadcast %19 : f32 to vector<16x16xf32>
    %21 = arith.mulf %20, %7 : vector<16x16xf32>
    %22 = arith.addf %18, %21 : vector<16x16xf32>
    %c1_20 = arith.constant 1 : index
    %c0_21 = arith.constant 0 : index
    %23 = memref.load %arg2[%c1_20, %c0_21] : memref<4x4xf32, #tpu.memory_space<smem>>
    %24 = vector.broadcast %23 : f32 to vector<16x16xf32>
    %25 = arith.mulf %24, %1 : vector<16x16xf32>
    %c1_22 = arith.constant 1 : index
    %c1_23 = arith.constant 1 : index
    %26 = memref.load %arg2[%c1_22, %c1_23] : memref<4x4xf32, #tpu.memory_space<smem>>
    %27 = vector.broadcast %26 : f32 to vector<16x16xf32>
    %28 = arith.mulf %27, %3 : vector<16x16xf32>
    %29 = arith.addf %25, %28 : vector<16x16xf32>
    %c1_24 = arith.constant 1 : index
    %c2_25 = arith.constant 2 : index
    %30 = memref.load %arg2[%c1_24, %c2_25] : memref<4x4xf32, #tpu.memory_space<smem>>
    %31 = vector.broadcast %30 : f32 to vector<16x16xf32>
    %32 = arith.mulf %31, %5 : vector<16x16xf32>
    %33 = arith.addf %29, %32 : vector<16x16xf32>
    %c1_26 = arith.constant 1 : index
    %c3_27 = arith.constant 3 : index
    %34 = memref.load %arg2[%c1_26, %c3_27] : memref<4x4xf32, #tpu.memory_space<smem>>
    %35 = vector.broadcast %34 : f32 to vector<16x16xf32>
    %36 = arith.mulf %35, %7 : vector<16x16xf32>
    %37 = arith.addf %33, %36 : vector<16x16xf32>
    %c2_28 = arith.constant 2 : index
    %c0_29 = arith.constant 0 : index
    %38 = memref.load %arg2[%c2_28, %c0_29] : memref<4x4xf32, #tpu.memory_space<smem>>
    %39 = vector.broadcast %38 : f32 to vector<16x16xf32>
    %40 = arith.mulf %39, %1 : vector<16x16xf32>
    %c2_30 = arith.constant 2 : index
    %c1_31 = arith.constant 1 : index
    %41 = memref.load %arg2[%c2_30, %c1_31] : memref<4x4xf32, #tpu.memory_space<smem>>
    %42 = vector.broadcast %41 : f32 to vector<16x16xf32>
    %43 = arith.mulf %42, %3 : vector<16x16xf32>
    %44 = arith.addf %40, %43 : vector<16x16xf32>
    %c2_32 = arith.constant 2 : index
    %c2_33 = arith.constant 2 : index
    %45 = memref.load %arg2[%c2_32, %c2_33] : memref<4x4xf32, #tpu.memory_space<smem>>
    %46 = vector.broadcast %45 : f32 to vector<16x16xf32>
    %47 = arith.mulf %46, %5 : vector<16x16xf32>
    %48 = arith.addf %44, %47 : vector<16x16xf32>
    %c2_34 = arith.constant 2 : index
    %c3_35 = arith.constant 3 : index
    %49 = memref.load %arg2[%c2_34, %c3_35] : memref<4x4xf32, #tpu.memory_space<smem>>
    %50 = vector.broadcast %49 : f32 to vector<16x16xf32>
    %51 = arith.mulf %50, %7 : vector<16x16xf32>
    %52 = arith.addf %48, %51 : vector<16x16xf32>
    %c3_36 = arith.constant 3 : index
    %c0_37 = arith.constant 0 : index
    %53 = memref.load %arg2[%c3_36, %c0_37] : memref<4x4xf32, #tpu.memory_space<smem>>
    %54 = vector.broadcast %53 : f32 to vector<16x16xf32>
    %55 = arith.mulf %54, %1 : vector<16x16xf32>
    %c3_38 = arith.constant 3 : index
    %c1_39 = arith.constant 1 : index
    %56 = memref.load %arg2[%c3_38, %c1_39] : memref<4x4xf32, #tpu.memory_space<smem>>
    %57 = vector.broadcast %56 : f32 to vector<16x16xf32>
    %58 = arith.mulf %57, %3 : vector<16x16xf32>
    %59 = arith.addf %55, %58 : vector<16x16xf32>
    %c3_40 = arith.constant 3 : index
    %c2_41 = arith.constant 2 : index
    %60 = memref.load %arg2[%c3_40, %c2_41] : memref<4x4xf32, #tpu.memory_space<smem>>
    %61 = vector.broadcast %60 : f32 to vector<16x16xf32>
    %62 = arith.mulf %61, %5 : vector<16x16xf32>
    %63 = arith.addf %59, %62 : vector<16x16xf32>
    %c3_42 = arith.constant 3 : index
    %c3_43 = arith.constant 3 : index
    %64 = memref.load %arg2[%c3_42, %c3_43] : memref<4x4xf32, #tpu.memory_space<smem>>
    %65 = vector.broadcast %64 : f32 to vector<16x16xf32>
    %66 = arith.mulf %65, %7 : vector<16x16xf32>
    %67 = arith.addf %63, %66 : vector<16x16xf32>
    %68 = arith.maximumf %22, %37 : vector<16x16xf32>
    %69 = arith.maximumf %68, %52 : vector<16x16xf32>
    %70 = arith.maximumf %69, %67 : vector<16x16xf32>
    %71 = arith.subf %22, %70 : vector<16x16xf32>
    %72 = math.exp %71 : vector<16x16xf32>
    %73 = arith.subf %37, %70 : vector<16x16xf32>
    %74 = math.exp %73 : vector<16x16xf32>
    %75 = arith.subf %52, %70 : vector<16x16xf32>
    %76 = math.exp %75 : vector<16x16xf32>
    %77 = arith.subf %67, %70 : vector<16x16xf32>
    %78 = math.exp %77 : vector<16x16xf32>
    %79 = arith.addf %72, %74 : vector<16x16xf32>
    %80 = arith.addf %79, %76 : vector<16x16xf32>
    %81 = arith.addf %80, %78 : vector<16x16xf32>
    %cst = arith.constant 1.000000e+00 : f32
    %82 = vector.broadcast %cst : f32 to vector<16x16xf32>
    %83 = arith.divf %82, %81 : vector<16x16xf32>
    %c0_44 = arith.constant 0 : index
    %c0_45 = arith.constant 0 : index
    %84 = vector.load %arg3[%c0_44, %c0_45] : memref<200x16xf32, #tpu.memory_space<vmem>>, vector<200x16xf32>
    %c0_46 = arith.constant 0 : index
    %c0_47 = arith.constant 0 : index
    %85 = vector.load %arg4[%c0_46, %c0_47] : memref<16x200xf32, #tpu.memory_space<vmem>>, vector<16x200xf32>
    %c0_48 = arith.constant 0 : index
    %c0_49 = arith.constant 0 : index
    %86 = vector.load %arg5[%c0_48, %c0_49] : memref<200x200xf32, #tpu.memory_space<vmem>>, vector<200x200xf32>
    %87 = arith.mulf %72, %83 : vector<16x16xf32>
    %cst_50 = arith.constant dense<0.000000e+00> : vector<16x200xf32>
    %88 = tpu.matmul %87, %85, %cst_50 {dimension_numbers = #tpu.dot_dimension_numbers<[1], [0], [0], [1], [0, 0, 1, 1], [], []>} : vector<16x16xf32>, vector<16x200xf32>, vector<16x200xf32> -> vector<16x200xf32>
    %cst_51 = arith.constant dense<0.000000e+00> : vector<200x200xf32>
    %89 = tpu.matmul %84, %88, %cst_51 {dimension_numbers = #tpu.dot_dimension_numbers<[1], [0], [0], [1], [0, 0, 1, 1], [], []>} : vector<200x16xf32>, vector<16x200xf32>, vector<200x200xf32> -> vector<200x200xf32>
    %90 = arith.addf %89, %86 : vector<200x200xf32>
    %c0_52 = arith.constant 0 : index
    %c0_53 = arith.constant 0 : index
    %c0_54 = arith.constant 0 : index
    %c0_55 = arith.constant 0 : index
    %91 = vector.load %arg6[%c0_52, %c0_53, %c0_54, %c0_55] : memref<1x4x200x200xf32, #tpu.memory_space<vmem>>, vector<1x1x200x200xf32>
    %92 = vector.shape_cast %91 : vector<1x1x200x200xf32> to vector<200x200xf32>
    %93 = vector.shape_cast %90 : vector<200x200xf32> to vector<1x1x200x200xf32>
    tpu.vector_store %arg6[%c0_52, %c0_53, %c0_54, %c0_55], %93 {strides = array<i32>} : memref<1x4x200x200xf32, #tpu.memory_space<vmem>>, vector<1x1x200x200xf32>,
    %94 = arith.mulf %74, %83 : vector<16x16xf32>
    %cst_56 = arith.constant dense<0.000000e+00> : vector<16x200xf32>
    %95 = tpu.matmul %94, %85, %cst_56 {dimension_numbers = #tpu.dot_dimension_numbers<[1], [0], [0], [1], [0, 0, 1, 1], [], []>} : vector<16x16xf32>, vector<16x200xf32>, vector<16x200xf32> -> vector<16x200xf32>
    %cst_57 = arith.constant dense<0.000000e+00> : vector<200x200xf32>
    %96 = tpu.matmul %84, %95, %cst_57 {dimension_numbers = #tpu.dot_dimension_numbers<[1], [0], [0], [1], [0, 0, 1, 1], [], []>} : vector<200x16xf32>, vector<16x200xf32>, vector<200x200xf32> -> vector<200x200xf32>
    %97 = arith.addf %96, %86 : vector<200x200xf32>
    %c0_58 = arith.constant 0 : index
    %c1_59 = arith.constant 1 : index
    %c0_60 = arith.constant 0 : index
    %c0_61 = arith.constant 0 : index
    %98 = vector.load %arg6[%c0_58, %c1_59, %c0_60, %c0_61] : memref<1x4x200x200xf32, #tpu.memory_space<vmem>>, vector<1x1x200x200xf32>
    %99 = vector.shape_cast %98 : vector<1x1x200x200xf32> to vector<200x200xf32>
    %100 = vector.shape_cast %97 : vector<200x200xf32> to vector<1x1x200x200xf32>
    tpu.vector_store %arg6[%c0_58, %c1_59, %c0_60, %c0_61], %100 {strides = array<i32>} : memref<1x4x200x200xf32, #tpu.memory_space<vmem>>, vector<1x1x200x200xf32>,
    %101 = arith.mulf %76, %83 : vector<16x16xf32>
    %cst_62 = arith.constant dense<0.000000e+00> : vector<16x200xf32>
    %102 = tpu.matmul %101, %85, %cst_62 {dimension_numbers = #tpu.dot_dimension_numbers<[1], [0], [0], [1], [0, 0, 1, 1], [], []>} : vector<16x16xf32>, vector<16x200xf32>, vector<16x200xf32> -> vector<16x200xf32>
    %cst_63 = arith.constant dense<0.000000e+00> : vector<200x200xf32>
    %103 = tpu.matmul %84, %102, %cst_63 {dimension_numbers = #tpu.dot_dimension_numbers<[1], [0], [0], [1], [0, 0, 1, 1], [], []>} : vector<200x16xf32>, vector<16x200xf32>, vector<200x200xf32> -> vector<200x200xf32>
    %104 = arith.addf %103, %86 : vector<200x200xf32>
    %c0_64 = arith.constant 0 : index
    %c2_65 = arith.constant 2 : index
    %c0_66 = arith.constant 0 : index
    %c0_67 = arith.constant 0 : index
    %105 = vector.load %arg6[%c0_64, %c2_65, %c0_66, %c0_67] : memref<1x4x200x200xf32, #tpu.memory_space<vmem>>, vector<1x1x200x200xf32>
    %106 = vector.shape_cast %105 : vector<1x1x200x200xf32> to vector<200x200xf32>
    %107 = vector.shape_cast %104 : vector<200x200xf32> to vector<1x1x200x200xf32>
    tpu.vector_store %arg6[%c0_64, %c2_65, %c0_66, %c0_67], %107 {strides = array<i32>} : memref<1x4x200x200xf32, #tpu.memory_space<vmem>>, vector<1x1x200x200xf32>,
    %108 = arith.mulf %78, %83 : vector<16x16xf32>
    %cst_68 = arith.constant dense<0.000000e+00> : vector<16x200xf32>
    %109 = tpu.matmul %108, %85, %cst_68 {dimension_numbers = #tpu.dot_dimension_numbers<[1], [0], [0], [1], [0, 0, 1, 1], [], []>} : vector<16x16xf32>, vector<16x200xf32>, vector<16x200xf32> -> vector<16x200xf32>
    %cst_69 = arith.constant dense<0.000000e+00> : vector<200x200xf32>
    %110 = tpu.matmul %84, %109, %cst_69 {dimension_numbers = #tpu.dot_dimension_numbers<[1], [0], [0], [1], [0, 0, 1, 1], [], []>} : vector<200x16xf32>, vector<16x200xf32>, vector<200x200xf32> -> vector<200x200xf32>
    %111 = arith.addf %110, %86 : vector<200x200xf32>
    %c0_70 = arith.constant 0 : index
    %c3_71 = arith.constant 3 : index
    %c0_72 = arith.constant 0 : index
    %c0_73 = arith.constant 0 : index
    %112 = vector.load %arg6[%c0_70, %c3_71, %c0_72, %c0_73] : memref<1x4x200x200xf32, #tpu.memory_space<vmem>>, vector<1x1x200x200xf32>
    %113 = vector.shape_cast %112 : vector<1x1x200x200xf32> to vector<200x200xf32>
    %114 = vector.shape_cast %111 : vector<200x200xf32> to vector<1x1x200x200xf32>
    tpu.vector_store %arg6[%c0_70, %c3_71, %c0_72, %c0_73], %114 {strides = array<i32>} : memref<1x4x200x200xf32, #tpu.memory_space<vmem>>, vector<1x1x200x200xf32>,
    return
  }
  func.func @transform_0(%arg0: i32) -> (i32, i32, i32, i32) {
    %c0_i32 = arith.constant 0 : i32
    %c0_i32_0 = arith.constant 0 : i32
    %c0_i32_1 = arith.constant 0 : i32
    %c0_i32_2 = arith.constant 0 : i32
    return %arg0, %c0_i32, %c0_i32_0, %c0_i32_1 : i32, i32, i32, i32
  }
  func.func @transform_1(%arg0: i32) -> (i32, i32) {
    %c0_i32 = arith.constant 0 : i32
    %c0_i32_0 = arith.constant 0 : i32
    %c0_i32_1 = arith.constant 0 : i32
    return %c0_i32, %c0_i32_0 : i32, i32
  }
  func.func @transform_2(%arg0: i32) -> (i32, i32) {
    %c0_i32 = arith.constant 0 : i32
    %c0_i32_0 = arith.constant 0 : i32
    %c0_i32_1 = arith.constant 0 : i32
    return %c0_i32, %c0_i32_0 : i32, i32
  }
  func.func @transform_3(%arg0: i32) -> (i32, i32) {
    %c0_i32 = arith.constant 0 : i32
    %c0_i32_0 = arith.constant 0 : i32
    %c0_i32_1 = arith.constant 0 : i32
    return %c0_i32, %c0_i32_0 : i32, i32
  }
  func.func @transform_4(%arg0: i32) -> (i32, i32) {
    %c0_i32 = arith.constant 0 : i32
    %c0_i32_0 = arith.constant 0 : i32
    %c0_i32_1 = arith.constant 0 : i32
    return %c0_i32, %c0_i32_0 : i32, i32
  }
  func.func @transform_5(%arg0: i32) -> (i32, i32, i32, i32) {
    %c0_i32 = arith.constant 0 : i32
    %c0_i32_0 = arith.constant 0 : i32
    %c0_i32_1 = arith.constant 0 : i32
    %c0_i32_2 = arith.constant 0 : i32
    return %arg0, %c0_i32, %c0_i32_0, %c0_i32_1 : i32, i32, i32, i32
  }
}

</mosaic_0001>

<bundles_post_ra>
// kernel: tpu_custom_call.1
= control target key start
LH: loop header
LB: loop body
LE: loop exit
PB: predicated region body
PF: predicated region fallthrough
CT: control target
= control target key end

     0   :  { %10 = vsyncpa [#allocation3], 0  ;;  %s4103_s0 = inlined_call_operand.hbm [shape: f32[2,4,16,16], index: 0, kind: input, shape index: {}]   ;;  %s4104_s1 = inlined_call_operand.hbm [shape: f32[4,4], index: 1, kind: input, shape index: {}]   ;;  %s4105_s2 = inlined_call_operand.vmem [shape: f32[200,16], index: 2, kind: input, shape index: {}]   ;;  %s4106_s3 = inlined_call_operand.hbm [shape: f32[16,200], index: 3, kind: input, shape index: {}]   ;;  %s4107_s4 = inlined_call_operand.hbm [shape: f32[200,200], index: 4, kind: input, shape index: {}]   ;;  %s4108_s5 = inlined_call_operand.hbm [shape: f32[2,4,200,200], index: 5, kind: output, shape index: {}]  }
   0x1   :  { %12 = vsyncpa [#allocation3 + $0x1], 0 }
   0x2   :  { %13 = vsyncpa [#allocation5], 0 }
   0x3   :  { %14 = vsyncpa [#allocation8], 0 }
   0x4   :  { %15 = vsyncpa [#allocation4], 0 }
   0x5   :  { %17 = vsyncpa [#allocation4 + $0x1], 0  ;;  %s2712_s18 = smov 0   ;;  %s2714_s19 = smov 0  }
   0x6   :  { %s2716_s20 = smov 0   ;;  %s2718_s21 = smov 0  }
   0x7 LB: > { %s2733_s22 = sadd.s32 4294967295, %s2668_s21   ;;  %s2100_s23 = sadd.s32 4294967294, %s2668_s21   ;;  %s2668_s21 = sphi %s2718_s21, %s4226_s21   ;;  %s2664_s20 = sphi %s2716_s20, %s4225_s20   ;;  %s2660_s19 = sphi %s2714_s19, %s4224_s19   ;;  %s2656_s18 = sphi %s2712_s18, %s4223_s18  }
   0x8   : > { %p43_p0 = scmp.ne.s32.totalorder %s2660_s19, %s2656_s18  ;;  %p4109_p1 = scmp.eq.s32.totalorder %s2733_s22, 0 }
   0x9   : > { %p151_p2 = scmp.eq.s32.totalorder %s2733_s22, 1  ;;  %p157_p3 = scmp.eq.s32.totalorder %s2100_s23, 1 }
   0xa   : > { %p2742_p4 = por %p4109_p1, %p43_p0  ;;  %p2101_p5 = scmp.ge.s32.totalorder %s2668_s21, 1 }
   0xb   : > { %p2747_p6 = por %p157_p3, %p43_p0  ;;  %p164_p7 = scmp.lt.s32.totalorder %s2668_s21, 3 }
   0xc   : > { %s4161_s24 = scalar_select %p2742_p4, 1, 0 }
   0xd   : > { %s4162_s25 = scalar_select %p2747_p6, 1, 0 }
   0xe   : > { %p2752_p8 = pnand %p2101_p5, %p164_p7  ;;  %s2670_s27 = smov [#allocation7]  }
   0xf   : > { %s188_s28 = sshll.u32 %s2670_s27, 4  ;;  %s2671_s30 = smov [#allocation9]   ;;  %s189_s28 = int_to_ptr.vmem [resolvable:$true] %s188_s28 }
  0x10   : > { %s4163_s26 = scalar_select %p2752_p8, 1, 0 }
  0x11   : > { %p2415_p9 = pneg %p2752_p8  ;;  %s201_s6 = sshll.u32 %s2671_s30, 4  ;;  %s202_s6 = int_to_ptr.vmem [resolvable:$true] %s201_s6 }
  0x12   : > { %s2516_s7 = scalar_lea.vmem %s189_s28, 512  ;;  %p2524_p5 = scmp.lt.s32.totalorder %s189_s28, %s189_s28 }
  0x13   : > { %p2761_p11 = pnand %p2415_p9, %p4109_p1  ;;  %p2517_p13 = scmp.ne.s32.totalorder %s189_s28, %s2516_s7 }
  0x14   : > { %p2525_p7 = scmp.lt.s32.totalorder %s2516_s7, %s2516_s7 }
  0x15   : > { %p2507_p12 = pneg %p2761_p11 }
  0x16   : > { %p2526_p10 = por %p2525_p7, %p2524_p5 }
  0x17   : > { %p2519_p0 = pnand %p2517_p13, %p2507_p12 }
  0x19   : > { %p2520_p3 = pneg %p2519_p0 }
  0x1b   : > { %p2527_p9 = pnand %p2526_p10, %p2520_p3 }
  0x1d   : > { %2530 = shalt.err (!%p2527_p9)
}
  0x1e   : > { %s2672_s8 = smov 256   ;;  %s2673_s9 = smov 16  }
  0x1f   : > { %2421 = dma.hbm_to_vmem [thread:$0]  (!%p2761_p11), %s4106_s3, 512, %s189_s28, [#allocation8], %s2672_s8, %s2672_s8, %s2673_s9  }
  0x20   : > { %s2674_s12 = smov [#allocation6]   ;;  %s2553_s15 = scalar_lea.vmem %s202_s6, 6400 }
  0x21   : > { %2418 = dma.hbm_to_smem (!%p2761_p11), %s4104_s1, 64, %s2674_s12, [#allocation5]  }
  0x22   : > { %p2554_p13 = scmp.ne.s32.totalorder %s202_s6, %s2553_s15  ;;  %p2561_p3 = scmp.lt.s32.totalorder %s202_s6, %s202_s6 }
  0x23   : > { %p2562_p5 = scmp.lt.s32.totalorder %s2553_s15, %s2553_s15 }
  0x24   : > { %p2556_p10 = pnand %p2554_p13, %p2507_p12 }
  0x25   : > { %p2563_p7 = por %p2562_p5, %p2561_p3 }
  0x26   : > { %p2557_p0 = pneg %p2556_p10 }
  0x28   : > { %p2564_p9 = pnand %p2563_p7, %p2557_p0 }
  0x2a   : > { %2567 = shalt.err (!%p2564_p9)
}
  0x2b   : > { %2424 = dma.hbm_to_vmem [thread:$0]  (!%p2761_p11), %s4107_s4, 6400, %s202_s6, [#allocation8], %s2672_s8, %s2672_s8, %s2673_s9  }
  0x2c   : > { %s2789_s23 = sadd.s32 1, %s2668_s21   ;;  %s30_s28 = sadd.s32 1, %s2664_s20 }
  0x2d   : > { %s27_s27 = ssub.s32 %s2668_s21, %s2789_s23  ;;  %p37_p13 = scmp.ne.s32.totalorder %s2664_s20, %s2660_s19 }
  0x2e   : > { %p28_p12 = scmp.eq.s32.totalorder %s27_s27, 0  ;;  %p38_p10 = scmp.eq.s32.totalorder %s2668_s21, 0 }
  0x2f   : > { %p2436_p0 = scmp.lt.s32.totalorder %s2668_s21, 2  ;;  %p2803_p5 = por %p151_p2, %p37_p13 }
  0x30   : > { %s2799_s29 = scalar_select %p28_p12, %s2664_s20, %s30_s28  }
  0x31   : > { %p39_p3 = por %p38_p10, %p37_p13  ;;  %s215_s7 = sand.u32 1, %s2664_s20  }
  0x32   : > { %s4165_s30 = scalar_select %p2803_p5, 1, 0 }
  0x33   : > { %s2396_s10 = sshll.u32 %s2668_s21, 10  ;;  %s2106_s6 = sshll.u32 %s215_s7, 6 }
  0x34   : > { %s2812_s11 = scalar_lea.hbm %s4103_s0, %s2396_s10  ;;  %s219_s12 = scalar_lea.vmem [#allocation2], %s2106_s6 }
  0x35   : > { %s226_s13 = sshll.u32 %s219_s12, 4  ;;  %p2814_p11 = pnand %p2436_p0, %p39_p3  ;;  %s2818_s13 = int_to_ptr.vmem [resolvable:$true] %s226_s13 }
  0x36   : > { %s2820_s15 = scalar_lea.sflag [#allocation3], %s215_s7  ;;  %s2568_s16 = scalar_lea.hbm %s2812_s11, 1024 }
  0x37   : > { %p2569_p2 = scmp.ne.s32.totalorder %s2812_s11, %s2568_s16  ;;  %p2570_p7 = pneg %p2814_p11 }
  0x38   : > { %s2573_s28 = scalar_lea.hbm %s4103_s0, 2048  ;;  %p2574_p13 = scmp.lt.s32.totalorder %s2812_s11, %s4103_s0 }
  0x39   : > { %p2571_p9 = pnand %p2570_p7, %p2569_p2  ;;  %p2575_p10 = scmp.lt.s32.totalorder %s2573_s28, %s2568_s16 }
  0x3b   : > { %p2572_p12 = pneg %p2571_p9  ;;  %p2576_p0 = por %p2575_p10, %p2574_p13 }
  0x3d   : > { %p2577_p3 = pnand %p2576_p0, %p2572_p12 }
  0x3f   : > { %2580 = shalt.err (!%p2577_p3)
}
  0x40   : > { %s2581_s7 = scalar_lea.vmem %s2818_s13, 1024  ;;  %s2675_s8 = smov [#allocation2]  }
  0x41   : > { %p2582_p1 = scmp.ne.s32.totalorder %s2818_s13, %s2581_s7  ;;  %s2586_s9 = sshll.u32 %s2675_s8, 4  ;;  %s2587_s9 = int_to_ptr.vmem [resolvable:$false] %s2586_s9 }
  0x42   : > { %s2588_s12 = scalar_lea.vmem %s2587_s9, 2048  ;;  %p2589_p9 = scmp.lt.s32.totalorder %s2818_s13, %s2587_s9 }
  0x43   : > { %p2584_p6 = pnand %p2582_p1, %p2570_p7  ;;  %p2590_p5 = scmp.lt.s32.totalorder %s2588_s12, %s2581_s7 }
  0x45   : > { %p2585_p2 = pneg %p2584_p6  ;;  %p2591_p4 = por %p2590_p5, %p2589_p9 }
  0x47   : > { %p2592_p8 = pnand %p2591_p4, %p2585_p2 }
  0x49   : > { %2595 = shalt.err (!%p2592_p8)
}
  0x4a   : > { %s2676_s16 = smov 128   ;;  %s2677_s17 = smov 8  }
  0x4b   : > { %2428 = dma.hbm_to_vmem [thread:$0]  (!%p2814_p11), %s2812_s11, 1024, %s2818_s13, %s2820_s15, %s2676_s16, %s2676_s16, %s2677_s17  }
  0x4c   : > { %p4167_p1 = scmp.ne.s32.totalorder %s4163_s26, 0 }
  0x4e   : > { %238 = sbr.rel (%p4167_p1) target bundleno = 980 (0x3d4), region = 40 }
  0x53   : > { %s2844_s27 = sand.u32 1, %s2660_s19   ;;  %p4168_p4 = scmp.ne.s32.totalorder %s4161_s24, 0 }
  0x54   : > { %s2110_s28 = sshll.u32 %s2844_s27, 6  ;;  %s241_s10 = scalar_lea.sflag [#allocation3], %s2844_s27 }
  0x55   : > { %s2848_s6 = scalar_lea.vmem [#allocation2], %s2110_s28 }
  0x56   : > { %2639 = dma.done.wait (%p4168_p4), %s241_s10, 1024  }
  0x57   : > { %2641 = vsyncadd (%p4168_p4), %s241_s10, 4294966272  ;;  %p4169_p6 = scmp.eq.s32.totalorder %s2733_s22, 0 }
  0x59   : > { %2643 = dma.done.wait (%p4169_p6), [#allocation5], 64   ;;  %p4170_p8 = pmov %p4169_p6 }
  0x5a   : > { %p4171_p5 = pmov %p4169_p6 }
  0x5b   : > { %2645 = vsyncadd (%p4170_p8), [#allocation5], 4294967232 }
  0x5c   : > { %2647 = dma.done.wait (%p4171_p5), [#allocation8], 6912   ;;  %p4172_p11 = pmov %p4171_p5 }
  0x5e   : > { %2649 = vsyncadd (%p4172_p11), [#allocation8], 4294960384 }
  0x5f   : > { %261 = sfence }
  0x60   : > { %v2862_v0 = vld [vmem:[#allocation7 + $0x18] sm:$0xff]  ;;  %v2864_v1 = vld [vmem:[#allocation7 + $0x10] sm:$0xff]  ;;  %v2866_v2 = vld [vmem:[#allocation7 + $0x8] sm:$0xff]  ;;  %s295_s24 = sld [smem:[#allocation6]]  ;;  %v4113_v4 = vmov 0.0   ;;  %vm504_vm0 = vcmask 130048  }
  0x61   : > { %539 = vmatprep.subr.mxu1 %v2862_v0  ;;  %965 = vmatprep.subr.mxu0 %v2862_v0  ;;  %v2870_v3 = vld [vmem:[#allocation7] sm:$0xff]  ;;  %s2872_s26 = sld [smem:[#allocation6 + $0x1]]  ;;  %v2890_v6 = vld [vmem:[%s2848_s6 + $0x8] sm:$0xff]  ;;  %v2895_v7 = vld [vmem:[%s2848_s6 + $0x10] sm:$0xff]  ;;  %vm879_vm1 = vcmask 588800   ;;  %p4220_p12 = scmp.ne.s32.totalorder %s4165_s30, 0 }
  0x62   : > { %540 = vmatpush1.msra.mxu1 %v2864_v1  ;;  %966 = vmatpush1.msra.mxu0 %v2864_v1  ;;  %s2876_s11 = sld [smem:[#allocation6 + $0x2]]  ;;  %v2885_v5 = vld [vmem:[%s2848_s6] sm:$0xff]  ;;  %v2900_v8 = vld [vmem:[%s2848_s6 + $0x18] sm:$0xff]  ;;  %v2908_v11 = vld [vmem:[%s2848_s6 + $0x28] sm:$0xff] }
  0x63   : > { %541 = vmatprep.subr.mxu1 %v2866_v2  ;;  %967 = vmatprep.subr.mxu0 %v2866_v2  ;;  %s2880_s13 = sld [smem:[#allocation6 + $0x3]]  ;;  %v2903_v9 = vld [vmem:[%s2848_s6 + $0x20] sm:$0xff]  ;;  %v2911_v12 = vld [vmem:[%s2848_s6 + $0x30] sm:$0xff]  ;;  %v2923_v18 = vld [vmem:[%s2848_s6 + $0x38] sm:$0xff] }
  0x64   : > { %542 = vmatpush1.msra.mxu1 %v2870_v3  ;;  %575 = vmatprep.mubr.f32.mxu1 %v4113_v4  ;;  %s2887_s14 = sld [smem:[#allocation6 + $0x80]] }
  0x65   : > { %968 = vmatpush1.msra.mxu0 %v2870_v3  ;;  %1001 = vmatprep.mubr.f32.mxu0 %v4113_v4  ;;  %s2897_s15 = sld [smem:[#allocation6 + $0x81]] }
  0x66   : > { %v296_v10 = vstv %s295_s24  ;;  %s2905_s7 = sld [smem:[#allocation6 + $0x82]] }
  0x67   : > { %v297_v13 = vmul.f32 %v296_v10, %v2885_v5  ;;  %v300_v14 = vstv %s2872_s26  ;;  %s2915_s8 = sld [smem:[#allocation6 + $0x83]]  ;;  %v298_v15 = vmul.f32 %v296_v10, %v2890_v6  ;;  %s1983_s26 = scalar_lea.sflag [#allocation4], %s2844_s27 }
  0x68   : > { %v301_v16 = vmul.f32 %v2895_v7, %v300_v14  ;;  %v306_v17 = vstv %s2876_s11  ;;  %s2920_s9 = sld [smem:[#allocation6 + $0x100]]  ;;  %v302_v19 = vmul.f32 %v2900_v8, %v300_v14 }
  0x69   : > { %v307_v20 = vmul.f32 %v2903_v9, %v306_v17  ;;  %v312_v21 = vstv %s2880_s13  ;;  %s2928_s12 = sld [smem:[#allocation6 + $0x101]]  ;;  %v308_v22 = vmul.f32 %v2908_v11, %v306_v17  ;;  %s2679_s13 = smov [#allocation10]  }
  0x6a   : > { %v303_v23 = vadd.f32 %v301_v16, %v297_v13  ;;  %v313_v24 = vmul.f32 %v2911_v12, %v312_v21  ;;  %v318_v25 = vstv %s2887_s14  ;;  %s2933_s16 = sld [smem:[#allocation6 + $0x102]]  ;;  %v304_v26 = vadd.f32 %v302_v19, %v298_v15  ;;  %s2600_s14 = sshll.u32 %s2679_s13, 4  ;;  %s2601_s14 = int_to_ptr.vmem [resolvable:$false] %s2600_s14 }
  0x6b   : > { %v319_v27 = vmul.f32 %v318_v25, %v2885_v5  ;;  %v322_v28 = vstv %s2897_s15  ;;  %s2937_s17 = sld [smem:[#allocation6 + $0x103]]  ;;  %v314_v29 = vmul.f32 %v2923_v18, %v312_v21  ;;  %v320_v30 = vmul.f32 %v318_v25, %v2890_v6  ;;  %s2602_s15 = scalar_lea.vmem %s2601_s14, 51200 }
  0x6c   : > { %v309_v31 = vadd.f32 %v307_v20, %v303_v23  ;;  %v323_v32 = vmul.f32 %v2895_v7, %v322_v28  ;;  %v328_v33 = vstv %s2905_s7  ;;  %s2943_s28 = sld [smem:[#allocation6 + $0x180]]  ;;  %v310_v34 = vadd.f32 %v308_v22, %v304_v26  ;;  %s2397_s7 = smul.u32 1600, %s2844_s27 }
  0x6d   : > { %v329_v35 = vmul.f32 %v2903_v9, %v328_v33  ;;  %v334_v36 = vstv %s2915_s8  ;;  %s2947_s10 = sld [smem:[#allocation6 + $0x181]]  ;;  %v324_v37 = vmul.f32 %v2900_v8, %v322_v28  ;;  %v330_v38 = vmul.f32 %v2908_v11, %v328_v33 }
  0x6e   : > { %v315_v39 = vadd.f32 %v313_v24, %v309_v31  ;;  %v325_v40 = vadd.f32 %v323_v32, %v319_v27  ;;  %v335_v41 = vmul.f32 %v2911_v12, %v334_v36  ;;  %v340_v42 = vstv %s2920_s9  ;;  %s2953_s6 = sld [smem:[#allocation6 + $0x182]]  ;;  %s3309_s8 = scalar_lea.vmem [#allocation10], %s2397_s7 }
  0x6f   : > { %v341_v43 = vmul.f32 %v340_v42, %v2885_v5  ;;  %v344_v44 = vstv %s2928_s12  ;;  %s2957_s24 = sld [smem:[#allocation6 + $0x183]]  ;;  %v316_v45 = vadd.f32 %v314_v29, %v310_v34  ;;  %v326_v46 = vadd.f32 %v324_v37, %v320_v30 }
  0x70   : > { %v331_v47 = vadd.f32 %v329_v35, %v325_v40  ;;  %v345_v48 = vmul.f32 %v2895_v7, %v344_v44  ;;  %v350_v49 = vstv %s2933_s16  ;;  %v336_v50 = vmul.f32 %v2923_v18, %v334_v36 }
  0x71   : > { %v351_v51 = vmul.f32 %v2903_v9, %v350_v49  ;;  %v356_v52 = vstv %s2937_s17  ;;  %v332_v53 = vadd.f32 %v330_v38, %v326_v46  ;;  %v342_v54 = vmul.f32 %v340_v42, %v2890_v6 }
  0x72   : > { %v337_v55 = vadd.f32 %v335_v41, %v331_v47  ;;  %v347_v56 = vadd.f32 %v345_v48, %v341_v43  ;;  %v357_v57 = vmul.f32 %v2911_v12, %v356_v52  ;;  %v362_v58 = vstv %s2943_s28  ;;  %s2398_s28 = smul.u32 25600, %s2733_s22 }
  0x73   : > { %v363_v59 = vmul.f32 %v362_v58, %v2885_v5  ;;  %v366_v60 = vstv %s2947_s10  ;;  %v338_v61 = vadd.f32 %v336_v50, %v332_v53  ;;  %v346_v62 = vmul.f32 %v2900_v8, %v344_v44  ;;  %s1996_s10 = sshll.u32 %s3309_s8, 4  ;;  %s4052_s10 = int_to_ptr.vmem [resolvable:$true] %s1996_s10 }
  0x74   : > { %v353_v63 = vadd.f32 %v351_v51, %v347_v56  ;;  %v367_v10 = vmul.f32 %v2895_v7, %v366_v60  ;;  %v372_v13 = vstv %s2953_s6  ;;  %v383_v14 = vmax.f32 %v315_v39, %v337_v55  ;;  %s2596_s11 = scalar_lea.vmem %s4052_s10, 25600  ;;  %p2603_p0 = scmp.lt.s32.totalorder %s4052_s10, %s2601_s14 }
  0x75   : > { %v373_v15 = vmul.f32 %v2903_v9, %v372_v13  ;;  %v378_v16 = vstv %s2957_s24  ;;  %v348_v17 = vadd.f32 %v346_v62, %v342_v54  ;;  %v352_v19 = vmul.f32 %v2908_v11, %v350_v49  ;;  %s4050_s24 = scalar_lea.hbm %s4108_s5, %s2398_s28  ;;  %p2597_p7 = scmp.ne.s32.totalorder %s4052_s10, %s2596_s11 }
  0x76   : > { %v359_v20 = vadd.f32 %v357_v57, %v353_v63  ;;  %v369_v21 = vadd.f32 %v367_v10, %v363_v59  ;;  %v379_v22 = vmul.f32 %v2911_v12, %v378_v16  ;;  %v358_v5 = vmul.f32 %v2923_v18, %v356_v52  ;;  %p2604_p3 = scmp.lt.s32.totalorder %s2602_s15, %s2596_s11 }
  0x77   : > { %v354_v23 = vadd.f32 %v352_v19, %v348_v17  ;;  %v364_v24 = vmul.f32 %v362_v58, %v2890_v6  ;;  %v368_v25 = vmul.f32 %v2900_v8, %v366_v60  ;;  %v374_v7 = vmul.f32 %v2908_v11, %v372_v13  ;;  %p2598_p13 = pnand %p2597_p7, %p4220_p12 }
  0x78   : > { %v375_v26 = vadd.f32 %v373_v15, %v369_v21  ;;  %v385_v27 = vmax.f32 %v383_v14, %v359_v20  ;;  %v384_v9 = vmax.f32 %v316_v45, %v338_v61  ;;  %v380_v30 = vmul.f32 %v2923_v18, %v378_v16  ;;  %p2605_p2 = por %p2604_p3, %p2603_p0 }
  0x79   : > { %v360_v28 = vadd.f32 %v358_v5, %v354_v23  ;;  %v370_v29 = vadd.f32 %v368_v25, %v364_v24  ;;  %v423_v24 = vld [vmem:[%s4105_s2] sm:$0xff]  ;;  %v424_v25 = vld [vmem:[%s4105_s2 + $0x8] sm:$0xff]  ;;  %p2599_p10 = pneg %p2598_p13 }
  0x7a   : > { %v381_v31 = vadd.f32 %v379_v22, %v375_v26  ;;  %v3089_v26 = vld [vmem:[%s4105_s2 + $0x38] sm:$0xff] }
  0x7b   : > { %v376_v32 = vadd.f32 %v374_v7, %v370_v29  ;;  %v386_v33 = vmax.f32 %v384_v9, %v360_v28  ;;  %v3030_v7 = vld [vmem:[%s4105_s2 + $0x10] sm:$0xff]  ;;  %v3111_v9 = vld [vmem:[%s4105_s2 + $0x48] sm:$0xff]  ;;  %v3133_v29 = vld [vmem:[%s4105_s2 + $0x58] sm:$0xff]  ;;  %p2606_p9 = pnand %p2605_p2, %p2599_p10 }
  0x7c   : > { %v387_v12 = vmax.f32 %v385_v27, %v381_v31  ;;  %v3100_v27 = vld [vmem:[%s4105_s2 + $0x40] sm:$0xff] }
  0x7d   : > { %v382_v34 = vadd.f32 %v380_v30, %v376_v32  ;;  %v3144_v30 = vld [vmem:[%s4105_s2 + $0x60] sm:$0xff]  ;;  %v3166_v32 = vld [vmem:[%s4105_s2 + $0x70] sm:$0xff] }
  0x7e   : > { %v389_v35 = vsub.f32 %v315_v39, %v387_v12  ;;  %v395_v36 = vsub.f32 %v337_v55, %v387_v12  ;;  %v401_v37 = vsub.f32 %v359_v20, %v387_v12  ;;  %v407_v6 = vsub.f32 %v381_v31, %v387_v12  ;;  %v3155_v31 = vld [vmem:[%s4105_s2 + $0x68] sm:$0xff]  ;;  %v3188_v12 = vld [vmem:[%s4105_s2 + $0x80] sm:$0xff] }
  0x7f   : > { %v388_v38 = vmax.f32 %v386_v33, %v382_v34  ;;  %v3177_v33 = vld [vmem:[%s4105_s2 + $0x78] sm:$0xff] }
  0x80   : > { %v391_v8 = vmul.f32 1.442695, %v389_v35  ;;  %v397_v40 = vmul.f32 1.442695, %v395_v36  ;;  %v403_v11 = vmul.f32 1.442695, %v401_v37 }
  0x81   : > { %v409_v41 = vmul.f32 1.442695, %v407_v6  ;;  %v390_v42 = vsub.f32 %v316_v45, %v388_v38  ;;  %v396_v43 = vsub.f32 %v338_v61, %v388_v38  ;;  %v402_v44 = vsub.f32 %v360_v28, %v388_v38  ;;  %v3122_v28 = vld [vmem:[%s4105_s2 + $0x50] sm:$0xff]  ;;  %v3221_v36 = vld [vmem:[%s4105_s2 + $0x98] sm:$0xff]  ;;  %v3232_v37 = vld [vmem:[%s4105_s2 + $0xa0] sm:$0xff] }
  0x82   : > { %2483 = vpow2.f32 %v391_v8  ;;  %v408_v46 = vsub.f32 %v382_v34, %v388_v38  ;;  %v3199_v34 = vld [vmem:[%s4105_s2 + $0x88] sm:$0xff]  ;;  %v3210_v35 = vld [vmem:[%s4105_s2 + $0x90] sm:$0xff]  ;;  %v3265_v8 = vld [vmem:[%s4105_s2 + $0xb8] sm:$0xff] }
  0x83   : > { %2485 = vpow2.f32 %v397_v40  ;;  %v393_v18 = vmul.f32 1.442695, %v390_v42  ;;  %v399_v47 = vmul.f32 1.442695, %v396_v43  ;;  %v405_v48 = vmul.f32 1.442695, %v402_v44 }
  0x84   : > { %2487 = vpow2.f32 %v403_v11  ;;  %v411_v39 = vmul.f32 1.442695, %v408_v46  ;;  %v3243_v6 = vld [vmem:[%s4105_s2 + $0xa8] sm:$0xff]  ;;  %v3254_v38 = vld [vmem:[%s4105_s2 + $0xb0] sm:$0xff]  ;;  %v3276_v40 = vld [vmem:[%s4105_s2 + $0xc0] sm:$0xff] }
  0x85   : > { %2489 = vpow2.f32 %v409_v41  ;;  %v3301_v44 = vld [vmem:[#allocation9] sm:$0xff] }
  0x86   : > { %2491 = vpow2.f32 %v393_v18 }
  0x87   : > { %2493 = vpow2.f32 %v399_v47  ;;  %v3303_v47 = vld [vmem:[#allocation9 + $0x8] sm:$0xff] }
  0x88   : > { %2495 = vpow2.f32 %v405_v48 }
  0x89   : > { %2497 = vpow2.f32 %v411_v39 }
  0x8f   : > { %v2484_v49 = vpop.eup %2483 }
  0x90   : > { %v2486_v50 = vpop.eup %2485 }
  0x91   : > { %v2981_v51 = vpop.eup %2487  ;;  %v413_v45 = vadd.f32 %v2486_v50, %v2484_v49 }
  0x92   : > { %v2983_v52 = vpop.eup %2489 }
  0x93   : > { %v2492_v53 = vpop.eup %2491  ;;  %v415_v54 = vadd.f32 %v2981_v51, %v413_v45 }
  0x94   : > { %v2494_v55 = vpop.eup %2493 }
  0x95   : > { %v2986_v56 = vpop.eup %2495  ;;  %v417_v57 = vadd.f32 %v2983_v52, %v415_v54  ;;  %v414_v58 = vadd.f32 %v2494_v55, %v2492_v53 }
  0x96   : > { %v2989_v59 = vpop.eup %2497 }
  0x97   : > { %2499 = vrcp.f32 %v417_v57  ;;  %v416_v60 = vadd.f32 %v2986_v56, %v414_v58 }
  0x99   : > { %v418_v61 = vadd.f32 %v2989_v59, %v416_v60  ;;  %v3323_v60 = vld [vmem:[#allocation9 + $0x20] sm:$0xff] }
  0x9b   : > { %2501 = vrcp.f32 %v418_v61 }
  0xa4   : > { %v2993_v62 = vpop.eup %2499 }
  0xa5   : > { %v502_v63 = vmul.f32 %v2993_v62, %v2484_v49  ;;  %v929_v10 = vmul.f32 %v2993_v62, %v2486_v50  ;;  %v1280_v11 = vmul.f32 %v2993_v62, %v2981_v51  ;;  %v1631_v41 = vmul.f32 %v2993_v62, %v2983_v52  ;;  %v3307_v51 = vld [vmem:[#allocation9 + $0x10] sm:$0xff] }
  0xa7   : > { %2135 = vmatmul.mubr.msk.f32.vlgmr.msra.gmra.mxu1 %vm504_vm0, %v502_v63  ;;  %2162 = vmatmul.mubr.msk.f32.vlgmr.msra.gmra.mxu0 %vm504_vm0, %v929_v10 }
  0xa8   : > { %v2999_v13 = vpop.eup %2501  ;;  %581 = vmatprep.mubr.f32.mxu1 %v4113_v4  ;;  %1007 = vmatprep.mubr.f32.mxu0 %v4113_v4 }
  0xa9   : > { %v503_v14 = vmul.f32 %v2999_v13, %v2492_v53  ;;  %v930_v15 = vmul.f32 %v2999_v13, %v2494_v55  ;;  %v1281_v42 = vmul.f32 %v2999_v13, %v2986_v56  ;;  %v1632_v43 = vmul.f32 %v2999_v13, %v2989_v59  ;;  %v3315_v55 = vld [vmem:[#allocation9 + $0x18] sm:$0xff]  ;;  %v3329_v13 = vld [vmem:[#allocation9 + $0x28] sm:$0xff] }
  0xab   : > { %2136 = vmatmul.mubr.msk.f32.gmra.mxu1 %vm504_vm0, %v503_v14  ;;  %2163 = vmatmul.mubr.msk.f32.gmra.mxu0 %vm504_vm0, %v930_v15 }
  0xac   : > { %727 = vmatprep.mubr.f32.mxu1 %v4113_v4  ;;  %1078 = vmatprep.mubr.f32.mxu0 %v4113_v4 }
 0x167   : > { %v577_v16 = vpop.f32.mrf.mxu1  ;;  %v1003_v17 = vpop.f32.mrf.mxu0 }
 0x169   : > { %v579_v19 = vpop.f32.mrf.mxu1  ;;  %v1005_v20 = vpop.f32.mrf.mxu0 }
 0x16b   : > { %v583_v21 = vpop.f32.mrf.mxu1  ;;  %v1009_v22 = vpop.f32.mrf.mxu0 }
 0x16d   : > { %v585_v5 = vpop.f32.mrf.mxu1  ;;  %v1011_v23 = vpop.f32.mrf.mxu0 }
 0x16e   : > { %691 = vmatprep.subr.mxu1 %v585_v5  ;;  %1042 = vmatprep.subr.mxu0 %v1011_v23  ;;  %v3343_v23 = vld [vmem:[#allocation9 + $0x38] sm:$0xff] }
 0x16f   : > { %692 = vmatpush1.msra.mxu1 %v583_v21  ;;  %1043 = vmatpush1.msra.mxu0 %v1009_v22 }
 0x170   : > { %693 = vmatprep.subr.mxu1 %v579_v19  ;;  %1044 = vmatprep.subr.mxu0 %v1005_v20  ;;  %v3337_v19 = vld [vmem:[#allocation9 + $0x30] sm:$0xff] }
 0x171   : > { %694 = vmatpush1.msra.mxu1 %v577_v16  ;;  %1045 = vmatpush1.msra.mxu0 %v1003_v17 }
 0x172   : > { %2137 = vmatmul.mubr.msk.f32.vlgmr.msra.gmra.mxu1 %vm504_vm0, %v423_v24  ;;  %2164 = vmatmul.mubr.msk.f32.vlgmr.msra.gmra.mxu0 %vm504_vm0, %v423_v24 }
 0x173   : > { %733 = vmatprep.mubr.f32.mxu1 %v4113_v4  ;;  %1084 = vmatprep.mubr.f32.mxu0 %v4113_v4 }
 0x174   : > { %1316 = vmatprep.subr.mxu1 %v2862_v0  ;;  %1667 = vmatprep.subr.mxu0 %v2862_v0  ;;  %v3045_v0 = vld [vmem:[%s4105_s2 + $0x18] sm:$0xff] }
 0x175   : > { %1317 = vmatpush1.msra.mxu1 %v2864_v1  ;;  %1668 = vmatpush1.msra.mxu0 %v2864_v1  ;;  %v3056_v1 = vld [vmem:[%s4105_s2 + $0x20] sm:$0xff] }
 0x176   : > { %2138 = vmatmul.mubr.msk.f32.gmra.mxu1 %vm504_vm0, %v424_v25  ;;  %2165 = vmatmul.mubr.msk.f32.gmra.mxu0 %vm504_vm0, %v424_v25 }
 0x177   : > { %739 = vmatprep.mubr.f32.mxu1 %v4113_v4  ;;  %1090 = vmatprep.mubr.f32.mxu0 %v4113_v4 }
 0x178   : > { %1318 = vmatprep.subr.mxu1 %v2866_v2  ;;  %1669 = vmatprep.subr.mxu0 %v2866_v2  ;;  %v3067_v2 = vld [vmem:[%s4105_s2 + $0x28] sm:$0xff] }
 0x179   : > { %1319 = vmatpush1.msra.mxu1 %v2870_v3  ;;  %1670 = vmatpush1.msra.mxu0 %v2870_v3  ;;  %v3078_v3 = vld [vmem:[%s4105_s2 + $0x30] sm:$0xff] }
 0x17a   : > { %2139 = vmatmul.mubr.msk.f32.gmra.mxu1 %vm504_vm0, %v3030_v7  ;;  %2166 = vmatmul.mubr.msk.f32.gmra.mxu0 %vm504_vm0, %v3030_v7 }
 0x17b   : > { %745 = vmatprep.mubr.f32.mxu1 %v4113_v4  ;;  %1096 = vmatprep.mubr.f32.mxu0 %v4113_v4 }
 0x17e   : > { %2140 = vmatmul.mubr.msk.f32.gmra.mxu1 %vm504_vm0, %v3045_v0  ;;  %2167 = vmatmul.mubr.msk.f32.gmra.mxu0 %vm504_vm0, %v3045_v0 }
 0x17f   : > { %751 = vmatprep.mubr.f32.mxu1 %v4113_v4  ;;  %1102 = vmatprep.mubr.f32.mxu0 %v4113_v4 }
 0x182   : > { %2141 = vmatmul.mubr.msk.f32.gmra.mxu1 %vm504_vm0, %v3056_v1  ;;  %2168 = vmatmul.mubr.msk.f32.gmra.mxu0 %vm504_vm0, %v3056_v1 }
 0x183   : > { %757 = vmatprep.mubr.f32.mxu1 %v4113_v4  ;;  %1108 = vmatprep.mubr.f32.mxu0 %v4113_v4 }
 0x186   : > { %2142 = vmatmul.mubr.msk.f32.gmra.mxu1 %vm504_vm0, %v3067_v2  ;;  %2169 = vmatmul.mubr.msk.f32.gmra.mxu0 %vm504_vm0, %v3067_v2 }
 0x187   : > { %763 = vmatprep.mubr.f32.mxu1 %v4113_v4  ;;  %1114 = vmatprep.mubr.f32.mxu0 %v4113_v4 }
 0x18a   : > { %2143 = vmatmul.mubr.msk.f32.gmra.mxu1 %vm504_vm0, %v3078_v3  ;;  %2170 = vmatmul.mubr.msk.f32.gmra.mxu0 %vm504_vm0, %v3078_v3 }
 0x18b   : > { %769 = vmatprep.mubr.f32.mxu1 %v4113_v4  ;;  %1120 = vmatprep.mubr.f32.mxu0 %v4113_v4 }
 0x18e   : > { %2144 = vmatmul.mubr.msk.f32.gmra.mxu1 %vm504_vm0, %v3089_v26  ;;  %2171 = vmatmul.mubr.msk.f32.gmra.mxu0 %vm504_vm0, %v3089_v26 }
 0x18f   : > { %775 = vmatprep.mubr.f32.mxu1 %v4113_v4  ;;  %1126 = vmatprep.mubr.f32.mxu0 %v4113_v4 }
 0x192   : > { %2145 = vmatmul.mubr.msk.f32.gmra.mxu1 %vm504_vm0, %v3100_v27  ;;  %2172 = vmatmul.mubr.msk.f32.gmra.mxu0 %vm504_vm0, %v3100_v27 }
 0x193   : > { %781 = vmatprep.mubr.f32.mxu1 %v4113_v4  ;;  %1132 = vmatprep.mubr.f32.mxu0 %v4113_v4 }
 0x196   : > { %2146 = vmatmul.mubr.msk.f32.gmra.mxu1 %vm504_vm0, %v3111_v9  ;;  %2173 = vmatmul.mubr.msk.f32.gmra.mxu0 %vm504_vm0, %v3111_v9 }
 0x197   : > { %787 = vmatprep.mubr.f32.mxu1 %v4113_v4  ;;  %1138 = vmatprep.mubr.f32.mxu0 %v4113_v4 }
 0x19a   : > { %2147 = vmatmul.mubr.msk.f32.gmra.mxu1 %vm504_vm0, %v3122_v28  ;;  %2174 = vmatmul.mubr.msk.f32.gmra.mxu0 %vm504_vm0, %v3122_v28 }
 0x19b   : > { %793 = vmatprep.mubr.f32.mxu1 %v4113_v4  ;;  %1144 = vmatprep.mubr.f32.mxu0 %v4113_v4 }
 0x19e   : > { %2148 = vmatmul.mubr.msk.f32.gmra.mxu1 %vm504_vm0, %v3133_v29  ;;  %2175 = vmatmul.mubr.msk.f32.gmra.mxu0 %vm504_vm0, %v3133_v29 }
 0x19f   : > { %799 = vmatprep.mubr.f32.mxu1 %v4113_v4  ;;  %1150 = vmatprep.mubr.f32.mxu0 %v4113_v4 }
 0x1a2   : > { %2149 = vmatmul.mubr.msk.f32.gmra.mxu1 %vm504_vm0, %v3144_v30  ;;  %2176 = vmatmul.mubr.msk.f32.gmra.mxu0 %vm504_vm0, %v3144_v30 }
 0x1a3   : > { %805 = vmatprep.mubr.f32.mxu1 %v4113_v4  ;;  %1156 = vmatprep.mubr.f32.mxu0 %v4113_v4 }
 0x1a6   : > { %2150 = vmatmul.mubr.msk.f32.gmra.mxu1 %vm504_vm0, %v3155_v31  ;;  %2177 = vmatmul.mubr.msk.f32.gmra.mxu0 %vm504_vm0, %v3155_v31 }
 0x1a7   : > { %811 = vmatprep.mubr.f32.mxu1 %v4113_v4  ;;  %1162 = vmatprep.mubr.f32.mxu0 %v4113_v4 }
 0x1aa   : > { %2151 = vmatmul.mubr.msk.f32.gmra.mxu1 %vm504_vm0, %v3166_v32  ;;  %2178 = vmatmul.mubr.msk.f32.gmra.mxu0 %vm504_vm0, %v3166_v32 }
 0x1ab   : > { %817 = vmatprep.mubr.f32.mxu1 %v4113_v4  ;;  %1168 = vmatprep.mubr.f32.mxu0 %v4113_v4 }
 0x1ae   : > { %2152 = vmatmul.mubr.msk.f32.gmra.mxu1 %vm504_vm0, %v3177_v33  ;;  %2179 = vmatmul.mubr.msk.f32.gmra.mxu0 %vm504_vm0, %v3177_v33 }
 0x1af   : > { %823 = vmatprep.mubr.f32.mxu1 %v4113_v4  ;;  %1174 = vmatprep.mubr.f32.mxu0 %v4113_v4 }
 0x1b2   : > { %2153 = vmatmul.mubr.msk.f32.gmra.mxu1 %vm504_vm0, %v3188_v12  ;;  %2180 = vmatmul.mubr.msk.f32.gmra.mxu0 %vm504_vm0, %v3188_v12 }
 0x1b3   : > { %829 = vmatprep.mubr.f32.mxu1 %v4113_v4  ;;  %1180 = vmatprep.mubr.f32.mxu0 %v4113_v4 }
 0x1b6   : > { %2154 = vmatmul.mubr.msk.f32.gmra.mxu1 %vm504_vm0, %v3199_v34  ;;  %2181 = vmatmul.mubr.msk.f32.gmra.mxu0 %vm504_vm0, %v3199_v34 }
 0x1b7   : > { %835 = vmatprep.mubr.f32.mxu1 %v4113_v4  ;;  %1186 = vmatprep.mubr.f32.mxu0 %v4113_v4 }
 0x1ba   : > { %2155 = vmatmul.mubr.msk.f32.gmra.mxu1 %vm504_vm0, %v3210_v35  ;;  %2182 = vmatmul.mubr.msk.f32.gmra.mxu0 %vm504_vm0, %v3210_v35 }
 0x1bb   : > { %841 = vmatprep.mubr.f32.mxu1 %v4113_v4  ;;  %1192 = vmatprep.mubr.f32.mxu0 %v4113_v4 }
 0x1be   : > { %2156 = vmatmul.mubr.msk.f32.gmra.mxu1 %vm504_vm0, %v3221_v36  ;;  %2183 = vmatmul.mubr.msk.f32.gmra.mxu0 %vm504_vm0, %v3221_v36 }
 0x1bf   : > { %847 = vmatprep.mubr.f32.mxu1 %v4113_v4  ;;  %1198 = vmatprep.mubr.f32.mxu0 %v4113_v4 }
 0x1c2   : > { %2157 = vmatmul.mubr.msk.f32.gmra.mxu1 %vm504_vm0, %v3232_v37  ;;  %2184 = vmatmul.mubr.msk.f32.gmra.mxu0 %vm504_vm0, %v3232_v37 }
 0x1c3   : > { %853 = vmatprep.mubr.f32.mxu1 %v4113_v4  ;;  %1204 = vmatprep.mubr.f32.mxu0 %v4113_v4 }
 0x1c6   : > { %2158 = vmatmul.mubr.msk.f32.gmra.mxu1 %vm504_vm0, %v3243_v6  ;;  %2185 = vmatmul.mubr.msk.f32.gmra.mxu0 %vm504_vm0, %v3243_v6 }
 0x1c7   : > { %859 = vmatprep.mubr.f32.mxu1 %v4113_v4  ;;  %1210 = vmatprep.mubr.f32.mxu0 %v4113_v4 }
 0x1ca   : > { %2159 = vmatmul.mubr.msk.f32.gmra.mxu1 %vm504_vm0, %v3254_v38  ;;  %2186 = vmatmul.mubr.msk.f32.gmra.mxu0 %vm504_vm0, %v3254_v38 }
 0x1cb   : > { %865 = vmatprep.mubr.f32.mxu1 %v4113_v4  ;;  %1216 = vmatprep.mubr.f32.mxu0 %v4113_v4 }
 0x1ce   : > { %2160 = vmatmul.mubr.msk.f32.gmra.mxu1 %vm504_vm0, %v3265_v8  ;;  %2187 = vmatmul.mubr.msk.f32.gmra.mxu0 %vm504_vm0, %v3265_v8 }
 0x1cf   : > { %871 = vmatprep.mubr.f32.mxu1 %v4113_v4  ;;  %1222 = vmatprep.mubr.f32.mxu0 %v4113_v4 }
 0x1d2   : > { %2161 = vmatmul.mubr.msk.f32.gmra.mxu1 %vm504_vm0, %v3276_v40  ;;  %2188 = vmatmul.mubr.msk.f32.gmra.mxu0 %vm504_vm0, %v3276_v40 }
 0x1d3   : > { %1352 = vmatprep.mubr.f32.mxu1 %v4113_v4  ;;  %1703 = vmatprep.mubr.f32.mxu0 %v4113_v4 }
 0x1d6   : > { %2239 = vmatmul.mubr.msk.f32.vlgmr.msra.gmra.mxu1 %vm504_vm0, %v1280_v11  ;;  %2316 = vmatmul.mubr.msk.f32.vlgmr.msra.gmra.mxu0 %vm504_vm0, %v1631_v41 }
 0x1d7   : > { %1358 = vmatprep.mubr.f32.mxu1 %v4113_v4  ;;  %1709 = vmatprep.mubr.f32.mxu0 %v4113_v4 }
 0x1da   : > { %2240 = vmatmul.mubr.msk.f32.gmra.mxu1 %vm504_vm0, %v1281_v42  ;;  %2317 = vmatmul.mubr.msk.f32.gmra.mxu0 %vm504_vm0, %v1632_v43  ;;  %v3351_v42 = vld [vmem:[#allocation9 + $0x40] sm:$0xff] }
 0x1db   : > { %1429 = vmatprep.mubr.f32.mxu1 %v4113_v4  ;;  %1780 = vmatprep.mubr.f32.mxu0 %v4113_v4 }
 0x232   : > { %v729_v46 = vpop.f32.mrf.mxu1  ;;  %v1080_v18 = vpop.f32.mrf.mxu0 }
 0x233   : > { %v730_v48 = vadd.f32 %v729_v46, %v3301_v44  ;;  %v1081_v39 = vadd.f32 %v1080_v18, %v3301_v44 }
 0x234   : > { %v731_v49 = vpop.f32.mrf.mxu1  ;;  %v1082_v50 = vpop.f32.mrf.mxu0 }
 0x235   : > { %878 = vst [vmem:[%s3309_s8] sm:$0xff] %v730_v48  ;;  %2189 = vst [vmem:[%s3309_s8 + $0x190] sm:$0xff] %v1081_v39  ;;  %v732_v45 = vadd.f32 %v731_v49, %v3303_v47  ;;  %v1083_v52 = vadd.f32 %v1082_v50, %v3303_v47  ;;  %v3357_v39 = vld [vmem:[#allocation9 + $0x48] sm:$0xff] }
 0x236   : > { %v735_v53 = vpop.f32.mrf.mxu1  ;;  %v1086_v54 = vpop.f32.mrf.mxu0 }
 0x237   : > { %880 = vst.msk [vmem:[%s3309_s8 + $0x8] sm:$0xff] %vm879_vm1, %v732_v45  ;;  %2190 = vst.msk [vmem:[%s3309_s8 + $0x198] sm:$0xff] %vm879_vm1, %v1083_v52  ;;  %v736_v56 = vadd.f32 %v735_v53, %v3307_v51  ;;  %v1087_v57 = vadd.f32 %v1086_v54, %v3307_v51  ;;  %v3365_v53 = vld [vmem:[#allocation9 + $0x50] sm:$0xff] }
 0x238   : > { %v737_v58 = vpop.f32.mrf.mxu1  ;;  %v1088_v59 = vpop.f32.mrf.mxu0 }
 0x239   : > { %881 = vst [vmem:[%s3309_s8 + $0x10] sm:$0xff] %v736_v56  ;;  %2191 = vst [vmem:[%s3309_s8 + $0x1a0] sm:$0xff] %v1087_v57  ;;  %v738_v61 = vadd.f32 %v737_v58, %v3315_v55  ;;  %v1089_v62 = vadd.f32 %v1088_v59, %v3315_v55  ;;  %v3371_v59 = vld [vmem:[#allocation9 + $0x58] sm:$0xff] }
 0x23a   : > { %v741_v63 = vpop.f32.mrf.mxu1  ;;  %v1092_v10 = vpop.f32.mrf.mxu0 }
 0x23b   : > { %882 = vst.msk [vmem:[%s3309_s8 + $0x18] sm:$0xff] %vm879_vm1, %v738_v61  ;;  %2192 = vst.msk [vmem:[%s3309_s8 + $0x1a8] sm:$0xff] %vm879_vm1, %v1089_v62  ;;  %v742_v14 = vadd.f32 %v741_v63, %v3323_v60  ;;  %v1093_v15 = vadd.f32 %v1092_v10, %v3323_v60 }
 0x23c   : > { %v743_v16 = vpop.f32.mrf.mxu1  ;;  %v1094_v17 = vpop.f32.mrf.mxu0 }
 0x23d   : > { %883 = vst [vmem:[%s3309_s8 + $0x20] sm:$0xff] %v742_v14  ;;  %2193 = vst [vmem:[%s3309_s8 + $0x1b0] sm:$0xff] %v1093_v15  ;;  %v744_v20 = vadd.f32 %v743_v16, %v3329_v13  ;;  %v1095_v21 = vadd.f32 %v1094_v17, %v3329_v13  ;;  %v3379_v14 = vld [vmem:[#allocation9 + $0x60] sm:$0xff] }
 0x23e   : > { %v747_v22 = vpop.f32.mrf.mxu1  ;;  %v1098_v5 = vpop.f32.mrf.mxu0 }
 0x23f   : > { %884 = vst.msk [vmem:[%s3309_s8 + $0x28] sm:$0xff] %vm879_vm1, %v744_v20  ;;  %2194 = vst.msk [vmem:[%s3309_s8 + $0x1b8] sm:$0xff] %vm879_vm1, %v1095_v21  ;;  %v748_v24 = vadd.f32 %v747_v22, %v3337_v19  ;;  %v1099_v25 = vadd.f32 %v1098_v5, %v3337_v19  ;;  %v3385_v21 = vld [vmem:[#allocation9 + $0x68] sm:$0xff] }
 0x240   : > { %v749_v11 = vpop.f32.mrf.mxu1  ;;  %v1100_v41 = vpop.f32.mrf.mxu0 }
 0x241   : > { %885 = vst [vmem:[%s3309_s8 + $0x30] sm:$0xff] %v748_v24  ;;  %2195 = vst [vmem:[%s3309_s8 + $0x1c0] sm:$0xff] %v1099_v25  ;;  %v750_v43 = vadd.f32 %v749_v11, %v3343_v23  ;;  %v1101_v46 = vadd.f32 %v1100_v41, %v3343_v23  ;;  %v3393_v11 = vld [vmem:[#allocation9 + $0x70] sm:$0xff] }
 0x242   : > { %v753_v18 = vpop.f32.mrf.mxu1  ;;  %v1104_v48 = vpop.f32.mrf.mxu0 }
 0x243   : > { %886 = vst.msk [vmem:[%s3309_s8 + $0x38] sm:$0xff] %vm879_vm1, %v750_v43  ;;  %2196 = vst.msk [vmem:[%s3309_s8 + $0x1c8] sm:$0xff] %vm879_vm1, %v1101_v46  ;;  %v754_v49 = vadd.f32 %v753_v18, %v3351_v42  ;;  %v1105_v50 = vadd.f32 %v1104_v48, %v3351_v42  ;;  %v3399_v48 = vld [vmem:[#allocation9 + $0x78] sm:$0xff] }
 0x244   : > { %v755_v45 = vpop.f32.mrf.mxu1  ;;  %v1106_v52 = vpop.f32.mrf.mxu0 }
 0x245   : > { %887 = vst [vmem:[%s3309_s8 + $0x40] sm:$0xff] %v754_v49  ;;  %2197 = vst [vmem:[%s3309_s8 + $0x1d0] sm:$0xff] %v1105_v50  ;;  %v756_v54 = vadd.f32 %v755_v45, %v3357_v39  ;;  %v1107_v56 = vadd.f32 %v1106_v52, %v3357_v39 }
 0x246   : > { %v759_v57 = vpop.f32.mrf.mxu1  ;;  %v1110_v58 = vpop.f32.mrf.mxu0 }
 0x247   : > { %888 = vst.msk [vmem:[%s3309_s8 + $0x48] sm:$0xff] %vm879_vm1, %v756_v54  ;;  %2198 = vst.msk [vmem:[%s3309_s8 + $0x1d8] sm:$0xff] %vm879_vm1, %v1107_v56  ;;  %v760_v61 = vadd.f32 %v759_v57, %v3365_v53  ;;  %v1111_v62 = vadd.f32 %v1110_v58, %v3365_v53  ;;  %v3407_v54 = vld [vmem:[#allocation9 + $0x80] sm:$0xff] }
 0x248   : > { %v761_v63 = vpop.f32.mrf.mxu1  ;;  %v1112_v10 = vpop.f32.mrf.mxu0 }
 0x249   : > { %889 = vst [vmem:[%s3309_s8 + $0x50] sm:$0xff] %v760_v61  ;;  %2199 = vst [vmem:[%s3309_s8 + $0x1e0] sm:$0xff] %v1111_v62  ;;  %v762_v15 = vadd.f32 %v761_v63, %v3371_v59  ;;  %v1113_v16 = vadd.f32 %v1112_v10, %v3371_v59  ;;  %v3413_v62 = vld [vmem:[#allocation9 + $0x88] sm:$0xff] }
 0x24a   : > { %v765_v17 = vpop.f32.mrf.mxu1  ;;  %v1116_v20 = vpop.f32.mrf.mxu0 }
 0x24b   : > { %890 = vst.msk [vmem:[%s3309_s8 + $0x58] sm:$0xff] %vm879_vm1, %v762_v15  ;;  %2200 = vst.msk [vmem:[%s3309_s8 + $0x1e8] sm:$0xff] %vm879_vm1, %v1113_v16  ;;  %v766_v22 = vadd.f32 %v765_v17, %v3379_v14  ;;  %v1117_v5 = vadd.f32 %v1116_v20, %v3379_v14  ;;  %v3421_v17 = vld [vmem:[#allocation9 + $0x90] sm:$0xff] }
 0x24c   : > { %v767_v24 = vpop.f32.mrf.mxu1  ;;  %v1118_v25 = vpop.f32.mrf.mxu0 }
 0x24d   : > { %891 = vst [vmem:[%s3309_s8 + $0x60] sm:$0xff] %v766_v22  ;;  %2201 = vst [vmem:[%s3309_s8 + $0x1f0] sm:$0xff] %v1117_v5  ;;  %v768_v41 = vadd.f32 %v767_v24, %v3385_v21  ;;  %v1119_v43 = vadd.f32 %v1118_v25, %v3385_v21  ;;  %v3427_v25 = vld [vmem:[#allocation9 + $0x98] sm:$0xff] }
 0x24e   : > { %v771_v46 = vpop.f32.mrf.mxu1  ;;  %v1122_v18 = vpop.f32.mrf.mxu0 }
 0x24f   : > { %892 = vst.msk [vmem:[%s3309_s8 + $0x68] sm:$0xff] %vm879_vm1, %v768_v41  ;;  %2202 = vst.msk [vmem:[%s3309_s8 + $0x1f8] sm:$0xff] %vm879_vm1, %v1119_v43  ;;  %v772_v49 = vadd.f32 %v771_v46, %v3393_v11  ;;  %v1123_v50 = vadd.f32 %v1122_v18, %v3393_v11 }
 0x250   : > { %v773_v45 = vpop.f32.mrf.mxu1  ;;  %v1124_v52 = vpop.f32.mrf.mxu0 }
 0x251   : > { %893 = vst [vmem:[%s3309_s8 + $0x70] sm:$0xff] %v772_v49  ;;  %2203 = vst [vmem:[%s3309_s8 + $0x200] sm:$0xff] %v1123_v50  ;;  %v774_v56 = vadd.f32 %v773_v45, %v3399_v48  ;;  %v1125_v57 = vadd.f32 %v1124_v52, %v3399_v48  ;;  %v3435_v49 = vld [vmem:[#allocation9 + $0xa0] sm:$0xff] }
 0x252   : > { %v777_v58 = vpop.f32.mrf.mxu1  ;;  %v1128_v61 = vpop.f32.mrf.mxu0 }
 0x253   : > { %894 = vst.msk [vmem:[%s3309_s8 + $0x78] sm:$0xff] %vm879_vm1, %v774_v56  ;;  %2204 = vst.msk [vmem:[%s3309_s8 + $0x208] sm:$0xff] %vm879_vm1, %v1125_v57  ;;  %v778_v63 = vadd.f32 %v777_v58, %v3407_v54  ;;  %v1129_v10 = vadd.f32 %v1128_v61, %v3407_v54  ;;  %v3441_v57 = vld [vmem:[#allocation9 + $0xa8] sm:$0xff] }
 0x254   : > { %v779_v15 = vpop.f32.mrf.mxu1  ;;  %v1130_v16 = vpop.f32.mrf.mxu0 }
 0x255   : > { %895 = vst [vmem:[%s3309_s8 + $0x80] sm:$0xff] %v778_v63  ;;  %2205 = vst [vmem:[%s3309_s8 + $0x210] sm:$0xff] %v1129_v10  ;;  %v780_v20 = vadd.f32 %v779_v15, %v3413_v62  ;;  %v1131_v22 = vadd.f32 %v1130_v16, %v3413_v62  ;;  %v3449_v15 = vld [vmem:[#allocation9 + $0xb0] sm:$0xff] }
 0x256   : > { %v783_v5 = vpop.f32.mrf.mxu1  ;;  %v1134_v24 = vpop.f32.mrf.mxu0 }
 0x257   : > { %896 = vst.msk [vmem:[%s3309_s8 + $0x88] sm:$0xff] %vm879_vm1, %v780_v20  ;;  %2206 = vst.msk [vmem:[%s3309_s8 + $0x218] sm:$0xff] %vm879_vm1, %v1131_v22  ;;  %v784_v41 = vadd.f32 %v783_v5, %v3421_v17  ;;  %v1135_v43 = vadd.f32 %v1134_v24, %v3421_v17  ;;  %v3455_v24 = vld [vmem:[#allocation9 + $0xb8] sm:$0xff] }
 0x258   : > { %v785_v46 = vpop.f32.mrf.mxu1  ;;  %v1136_v18 = vpop.f32.mrf.mxu0 }
 0x259   : > { %897 = vst [vmem:[%s3309_s8 + $0x90] sm:$0xff] %v784_v41  ;;  %2207 = vst [vmem:[%s3309_s8 + $0x220] sm:$0xff] %v1135_v43  ;;  %v786_v50 = vadd.f32 %v785_v46, %v3427_v25  ;;  %v1137_v45 = vadd.f32 %v1136_v18, %v3427_v25 }
 0x25a   : > { %v789_v52 = vpop.f32.mrf.mxu1  ;;  %v1140_v56 = vpop.f32.mrf.mxu0 }
 0x25b   : > { %898 = vst.msk [vmem:[%s3309_s8 + $0x98] sm:$0xff] %vm879_vm1, %v786_v50  ;;  %2208 = vst.msk [vmem:[%s3309_s8 + $0x228] sm:$0xff] %vm879_vm1, %v1137_v45  ;;  %v790_v58 = vadd.f32 %v789_v52, %v3435_v49  ;;  %v1141_v61 = vadd.f32 %v1140_v56, %v3435_v49  ;;  %v3463_v50 = vld [vmem:[#allocation9 + $0xc0] sm:$0xff] }
 0x25c   : > { %v791_v63 = vpop.f32.mrf.mxu1  ;;  %v1142_v10 = vpop.f32.mrf.mxu0 }
 0x25d   : > { %899 = vst [vmem:[%s3309_s8 + $0xa0] sm:$0xff] %v790_v58  ;;  %2209 = vst [vmem:[%s3309_s8 + $0x230] sm:$0xff] %v1141_v61  ;;  %v792_v16 = vadd.f32 %v791_v63, %v3441_v57  ;;  %v1143_v20 = vadd.f32 %v1142_v10, %v3441_v57  ;;  %v3469_v61 = vld [vmem:[#allocation9 + $0xc8] sm:$0xff] }
 0x25e   : > { %v795_v22 = vpop.f32.mrf.mxu1  ;;  %v1146_v5 = vpop.f32.mrf.mxu0  ;;  %4173 = vst [vmem:[#allocation15_spill] sm:$0xff] %v3469_v61 }
 0x25f   : > { %900 = vst.msk [vmem:[%s3309_s8 + $0xa8] sm:$0xff] %vm879_vm1, %v792_v16  ;;  %2210 = vst.msk [vmem:[%s3309_s8 + $0x238] sm:$0xff] %vm879_vm1, %v1143_v20  ;;  %v796_v41 = vadd.f32 %v795_v22, %v3449_v15  ;;  %v1147_v43 = vadd.f32 %v1146_v5, %v3449_v15  ;;  %v3477_v22 = vld [vmem:[#allocation9 + $0xd0] sm:$0xff] }
 0x260   : > { %v797_v46 = vpop.f32.mrf.mxu1  ;;  %v1148_v18 = vpop.f32.mrf.mxu0  ;;  %4174 = vst [vmem:[#allocation16_spill] sm:$0xff] %v3477_v22 }
 0x261   : > { %901 = vst [vmem:[%s3309_s8 + $0xb0] sm:$0xff] %v796_v41  ;;  %2211 = vst [vmem:[%s3309_s8 + $0x240] sm:$0xff] %v1147_v43  ;;  %v798_v45 = vadd.f32 %v797_v46, %v3455_v24  ;;  %v1149_v52 = vadd.f32 %v1148_v18, %v3455_v24  ;;  %v3483_v18 = vld [vmem:[#allocation9 + $0xd8] sm:$0xff] }
 0x262   : > { %v801_v56 = vpop.f32.mrf.mxu1  ;;  %v1152_v58 = vpop.f32.mrf.mxu0  ;;  %4175 = vst [vmem:[#allocation17_spill] sm:$0xff] %v3483_v18 }
 0x263   : > { %902 = vst.msk [vmem:[%s3309_s8 + $0xb8] sm:$0xff] %vm879_vm1, %v798_v45  ;;  %2212 = vst.msk [vmem:[%s3309_s8 + $0x248] sm:$0xff] %vm879_vm1, %v1149_v52  ;;  %v802_v63 = vadd.f32 %v801_v56, %v3463_v50  ;;  %v1153_v10 = vadd.f32 %v1152_v58, %v3463_v50 }
 0x264   : > { %v803_v16 = vpop.f32.mrf.mxu1  ;;  %v1154_v20 = vpop.f32.mrf.mxu0 }
 0x265   : > { %903 = vst [vmem:[%s3309_s8 + $0xc0] sm:$0xff] %v802_v63  ;;  %2213 = vst [vmem:[%s3309_s8 + $0x250] sm:$0xff] %v1153_v10  ;;  %v804_v5 = vadd.f32 %v803_v16, %v3469_v61  ;;  %v1155_v41 = vadd.f32 %v1154_v20, %v3469_v61  ;;  %v3491_v63 = vld [vmem:[#allocation9 + $0xe0] sm:$0xff] }
 0x266   : > { %v807_v43 = vpop.f32.mrf.mxu1  ;;  %v1158_v46 = vpop.f32.mrf.mxu0  ;;  %4176 = vst [vmem:[#allocation18_spill] sm:$0xff] %v3491_v63 }
 0x267   : > { %904 = vst.msk [vmem:[%s3309_s8 + $0xc8] sm:$0xff] %vm879_vm1, %v804_v5  ;;  %2214 = vst.msk [vmem:[%s3309_s8 + $0x258] sm:$0xff] %vm879_vm1, %v1155_v41  ;;  %v808_v45 = vadd.f32 %v807_v43, %v3477_v22  ;;  %v1159_v52 = vadd.f32 %v1158_v46, %v3477_v22  ;;  %v3497_v41 = vld [vmem:[#allocation9 + $0xe8] sm:$0xff] }
 0x268   : > { %v809_v56 = vpop.f32.mrf.mxu1  ;;  %v1160_v58 = vpop.f32.mrf.mxu0  ;;  %4177 = vst [vmem:[#allocation19_spill] sm:$0xff] %v3497_v41 }
 0x269   : > { %905 = vst [vmem:[%s3309_s8 + $0xd0] sm:$0xff] %v808_v45  ;;  %2215 = vst [vmem:[%s3309_s8 + $0x260] sm:$0xff] %v1159_v52  ;;  %v810_v10 = vadd.f32 %v809_v56, %v3483_v18  ;;  %v1161_v16 = vadd.f32 %v1160_v58, %v3483_v18  ;;  %v3505_v56 = vld [vmem:[#allocation9 + $0xf0] sm:$0xff] }
 0x26a   : > { %v813_v20 = vpop.f32.mrf.mxu1  ;;  %v1164_v5 = vpop.f32.mrf.mxu0  ;;  %4178 = vst [vmem:[#allocation20_spill] sm:$0xff] %v3505_v56 }
 0x26b   : > { %906 = vst.msk [vmem:[%s3309_s8 + $0xd8] sm:$0xff] %vm879_vm1, %v810_v10  ;;  %2216 = vst.msk [vmem:[%s3309_s8 + $0x268] sm:$0xff] %vm879_vm1, %v1161_v16  ;;  %v814_v43 = vadd.f32 %v813_v20, %v3491_v63  ;;  %v1165_v46 = vadd.f32 %v1164_v5, %v3491_v63  ;;  %v3511_v16 = vld [vmem:[#allocation9 + $0xf8] sm:$0xff] }
 0x26c   : > { %v815_v45 = vpop.f32.mrf.mxu1  ;;  %v1166_v52 = vpop.f32.mrf.mxu0  ;;  %4179 = vst [vmem:[#allocation21_spill] sm:$0xff] %v3511_v16 }
 0x26d   : > { %907 = vst [vmem:[%s3309_s8 + $0xe0] sm:$0xff] %v814_v43  ;;  %2217 = vst [vmem:[%s3309_s8 + $0x270] sm:$0xff] %v1165_v46  ;;  %v816_v58 = vadd.f32 %v815_v45, %v3497_v41  ;;  %v1167_v4 = vadd.f32 %v1166_v52, %v3497_v41  ;;  %v3519_v45 = vld [vmem:[#allocation9 + $0x100] sm:$0xff] }
 0x26e   : > { %v819_v18 = vpop.f32.mrf.mxu1  ;;  %v1170_v10 = vpop.f32.mrf.mxu0  ;;  %4180 = vst [vmem:[#allocation22_spill] sm:$0xff] %v3519_v45 }
 0x26f   : > { %908 = vst.msk [vmem:[%s3309_s8 + $0xe8] sm:$0xff] %vm879_vm1, %v816_v58  ;;  %2218 = vst.msk [vmem:[%s3309_s8 + $0x278] sm:$0xff] %vm879_vm1, %v1167_v4  ;;  %v820_v20 = vadd.f32 %v819_v18, %v3505_v56  ;;  %v1171_v5 = vadd.f32 %v1170_v10, %v3505_v56  ;;  %v3525_v4 = vld [vmem:[#allocation9 + $0x108] sm:$0xff] }
 0x270   : > { %v821_v43 = vpop.f32.mrf.mxu1  ;;  %v1172_v46 = vpop.f32.mrf.mxu0  ;;  %4181 = vst [vmem:[#allocation23_spill] sm:$0xff] %v3525_v4 }
 0x271   : > { %909 = vst [vmem:[%s3309_s8 + $0xf0] sm:$0xff] %v820_v20  ;;  %2219 = vst [vmem:[%s3309_s8 + $0x280] sm:$0xff] %v1171_v5  ;;  %v822_v52 = vadd.f32 %v821_v43, %v3511_v16  ;;  %v1173_v41 = vadd.f32 %v1172_v46, %v3511_v16  ;;  %v3533_v43 = vld [vmem:[#allocation9 + $0x110] sm:$0xff] }
 0x272   : > { %v825_v63 = vpop.f32.mrf.mxu1  ;;  %v1176_v58 = vpop.f32.mrf.mxu0  ;;  %4182 = vst [vmem:[#allocation24_spill] sm:$0xff] %v3533_v43 }
 0x273   : > { %910 = vst.msk [vmem:[%s3309_s8 + $0xf8] sm:$0xff] %vm879_vm1, %v822_v52  ;;  %2220 = vst.msk [vmem:[%s3309_s8 + $0x288] sm:$0xff] %vm879_vm1, %v1173_v41  ;;  %v826_v18 = vadd.f32 %v825_v63, %v3519_v45  ;;  %v1177_v10 = vadd.f32 %v1176_v58, %v3519_v45  ;;  %v3539_v41 = vld [vmem:[#allocation9 + $0x118] sm:$0xff] }
 0x274   : > { %v827_v20 = vpop.f32.mrf.mxu1  ;;  %v1178_v5 = vpop.f32.mrf.mxu0  ;;  %4183 = vst [vmem:[#allocation25_spill] sm:$0xff] %v3539_v41 }
 0x275   : > { %911 = vst [vmem:[%s3309_s8 + $0x100] sm:$0xff] %v826_v18  ;;  %2221 = vst [vmem:[%s3309_s8 + $0x290] sm:$0xff] %v1177_v10  ;;  %v828_v46 = vadd.f32 %v827_v20, %v3525_v4  ;;  %v1179_v16 = vadd.f32 %v1178_v5, %v3525_v4  ;;  %v3547_v20 = vld [vmem:[#allocation9 + $0x120] sm:$0xff] }
 0x276   : > { %v831_v56 = vpop.f32.mrf.mxu1  ;;  %v1182_v52 = vpop.f32.mrf.mxu0  ;;  %4184 = vst [vmem:[#allocation26_spill] sm:$0xff] %v3547_v20 }
 0x277   : > { %912 = vst.msk [vmem:[%s3309_s8 + $0x108] sm:$0xff] %vm879_vm1, %v828_v46  ;;  %2222 = vst.msk [vmem:[%s3309_s8 + $0x298] sm:$0xff] %vm879_vm1, %v1179_v16  ;;  %v832_v63 = vadd.f32 %v831_v56, %v3533_v43  ;;  %v1183_v58 = vadd.f32 %v1182_v52, %v3533_v43  ;;  %v3553_v16 = vld [vmem:[#allocation9 + $0x128] sm:$0xff] }
 0x278   : > { %v833_v18 = vpop.f32.mrf.mxu1  ;;  %v1184_v10 = vpop.f32.mrf.mxu0  ;;  %4185 = vst [vmem:[#allocation27_spill] sm:$0xff] %v3553_v16 }
 0x279   : > { %913 = vst [vmem:[%s3309_s8 + $0x110] sm:$0xff] %v832_v63  ;;  %2223 = vst [vmem:[%s3309_s8 + $0x2a0] sm:$0xff] %v1183_v58  ;;  %v834_v5 = vadd.f32 %v833_v18, %v3539_v41  ;;  %v1185_v4 = vadd.f32 %v1184_v10, %v3539_v41  ;;  %v3561_v18 = vld [vmem:[#allocation9 + $0x130] sm:$0xff] }
 0x27a   : > { %v837_v45 = vpop.f32.mrf.mxu1  ;;  %v1188_v46 = vpop.f32.mrf.mxu0  ;;  %4186 = vst [vmem:[#allocation28_spill] sm:$0xff] %v3561_v18 }
 0x27b   : > { %914 = vst.msk [vmem:[%s3309_s8 + $0x118] sm:$0xff] %vm879_vm1, %v834_v5  ;;  %2224 = vst.msk [vmem:[%s3309_s8 + $0x2a8] sm:$0xff] %vm879_vm1, %v1185_v4  ;;  %v838_v56 = vadd.f32 %v837_v45, %v3547_v20  ;;  %v1189_v52 = vadd.f32 %v1188_v46, %v3547_v20  ;;  %v3567_v4 = vld [vmem:[#allocation9 + $0x138] sm:$0xff] }
 0x27c   : > { %v839_v63 = vpop.f32.mrf.mxu1  ;;  %v1190_v58 = vpop.f32.mrf.mxu0  ;;  %4187 = vst [vmem:[#allocation29_spill] sm:$0xff] %v3567_v4 }
 0x27d   : > { %915 = vst [vmem:[%s3309_s8 + $0x120] sm:$0xff] %v838_v56  ;;  %2225 = vst [vmem:[%s3309_s8 + $0x2b0] sm:$0xff] %v1189_v52  ;;  %v840_v10 = vadd.f32 %v839_v63, %v3553_v16  ;;  %v1191_v41 = vadd.f32 %v1190_v58, %v3553_v16  ;;  %v3575_v63 = vld [vmem:[#allocation9 + $0x140] sm:$0xff] }
 0x27e   : > { %v843_v43 = vpop.f32.mrf.mxu1  ;;  %v1194_v5 = vpop.f32.mrf.mxu0  ;;  %4188 = vst [vmem:[#allocation30_spill] sm:$0xff] %v3575_v63 }
 0x27f   : > { %916 = vst.msk [vmem:[%s3309_s8 + $0x128] sm:$0xff] %vm879_vm1, %v840_v10  ;;  %2226 = vst.msk [vmem:[%s3309_s8 + $0x2b8] sm:$0xff] %vm879_vm1, %v1191_v41  ;;  %v844_v45 = vadd.f32 %v843_v43, %v3561_v18  ;;  %v1195_v46 = vadd.f32 %v1194_v5, %v3561_v18  ;;  %v3581_v41 = vld [vmem:[#allocation9 + $0x148] sm:$0xff] }
 0x280   : > { %v845_v56 = vpop.f32.mrf.mxu1  ;;  %v1196_v52 = vpop.f32.mrf.mxu0  ;;  %4189 = vst [vmem:[#allocation31_spill] sm:$0xff] %v3581_v41 }
 0x281   : > { %917 = vst [vmem:[%s3309_s8 + $0x130] sm:$0xff] %v844_v45  ;;  %2227 = vst [vmem:[%s3309_s8 + $0x2c0] sm:$0xff] %v1195_v46  ;;  %v846_v58 = vadd.f32 %v845_v56, %v3567_v4  ;;  %v1197_v16 = vadd.f32 %v1196_v52, %v3567_v4  ;;  %v3589_v56 = vld [vmem:[#allocation9 + $0x150] sm:$0xff] }
 0x282   : > { %v849_v20 = vpop.f32.mrf.mxu1  ;;  %v1200_v10 = vpop.f32.mrf.mxu0  ;;  %4190 = vst [vmem:[#allocation32_spill] sm:$0xff] %v3589_v56 }
 0x283   : > { %918 = vst.msk [vmem:[%s3309_s8 + $0x138] sm:$0xff] %vm879_vm1, %v846_v58  ;;  %2228 = vst.msk [vmem:[%s3309_s8 + $0x2c8] sm:$0xff] %vm879_vm1, %v1197_v16  ;;  %v850_v43 = vadd.f32 %v849_v20, %v3575_v63  ;;  %v1201_v5 = vadd.f32 %v1200_v10, %v3575_v63  ;;  %v3595_v16 = vld [vmem:[#allocation9 + $0x158] sm:$0xff] }
 0x284   : > { %v851_v45 = vpop.f32.mrf.mxu1  ;;  %v1202_v46 = vpop.f32.mrf.mxu0  ;;  %4191 = vst [vmem:[#allocation33_spill] sm:$0xff] %v3595_v16 }
 0x285   : > { %919 = vst [vmem:[%s3309_s8 + $0x140] sm:$0xff] %v850_v43  ;;  %2229 = vst [vmem:[%s3309_s8 + $0x2d0] sm:$0xff] %v1201_v5  ;;  %v852_v52 = vadd.f32 %v851_v45, %v3581_v41  ;;  %v1203_v4 = vadd.f32 %v1202_v46, %v3581_v41  ;;  %v3603_v45 = vld [vmem:[#allocation9 + $0x160] sm:$0xff] }
 0x286   : > { %v855_v18 = vpop.f32.mrf.mxu1  ;;  %v1206_v58 = vpop.f32.mrf.mxu0  ;;  %4192 = vst [vmem:[#allocation34_spill] sm:$0xff] %v3603_v45 }
 0x287   : > { %920 = vst.msk [vmem:[%s3309_s8 + $0x148] sm:$0xff] %vm879_vm1, %v852_v52  ;;  %2230 = vst.msk [vmem:[%s3309_s8 + $0x2d8] sm:$0xff] %vm879_vm1, %v1203_v4  ;;  %v856_v20 = vadd.f32 %v855_v18, %v3589_v56  ;;  %v1207_v10 = vadd.f32 %v1206_v58, %v3589_v56  ;;  %v3609_v4 = vld [vmem:[#allocation9 + $0x168] sm:$0xff] }
 0x288   : > { %v857_v43 = vpop.f32.mrf.mxu1  ;;  %v1208_v5 = vpop.f32.mrf.mxu0  ;;  %4193 = vst [vmem:[#allocation35_spill] sm:$0xff] %v3609_v4 }
 0x289   : > { %921 = vst [vmem:[%s3309_s8 + $0x150] sm:$0xff] %v856_v20  ;;  %2231 = vst [vmem:[%s3309_s8 + $0x2e0] sm:$0xff] %v1207_v10  ;;  %v858_v46 = vadd.f32 %v857_v43, %v3595_v16  ;;  %v1209_v41 = vadd.f32 %v1208_v5, %v3595_v16  ;;  %v3617_v43 = vld [vmem:[#allocation9 + $0x170] sm:$0xff] }
 0x28a   : > { %v861_v63 = vpop.f32.mrf.mxu1  ;;  %v1212_v52 = vpop.f32.mrf.mxu0  ;;  %4194 = vst [vmem:[#allocation36_spill] sm:$0xff] %v3617_v43 }
 0x28b   : > { %922 = vst.msk [vmem:[%s3309_s8 + $0x158] sm:$0xff] %vm879_vm1, %v858_v46  ;;  %2232 = vst.msk [vmem:[%s3309_s8 + $0x2e8] sm:$0xff] %vm879_vm1, %v1209_v41  ;;  %v862_v18 = vadd.f32 %v861_v63, %v3603_v45  ;;  %v1213_v58 = vadd.f32 %v1212_v52, %v3603_v45  ;;  %v3623_v41 = vld [vmem:[#allocation9 + $0x178] sm:$0xff]  ;;  %v3637_v45 = vld [vmem:[#allocation9 + $0x188] sm:$0xff] }
 0x28c   : > { %v863_v20 = vpop.f32.mrf.mxu1  ;;  %v1214_v10 = vpop.f32.mrf.mxu0  ;;  %4195 = vst [vmem:[#allocation37_spill] sm:$0xff] %v3623_v41 }
 0x28d   : > { %923 = vst [vmem:[%s3309_s8 + $0x160] sm:$0xff] %v862_v18  ;;  %2233 = vst [vmem:[%s3309_s8 + $0x2f0] sm:$0xff] %v1213_v58  ;;  %v864_v5 = vadd.f32 %v863_v20, %v3609_v4  ;;  %v1215_v16 = vadd.f32 %v1214_v10, %v3609_v4  ;;  %v3631_v20 = vld [vmem:[#allocation9 + $0x180] sm:$0xff] }
 0x28e   : > { %v867_v56 = vpop.f32.mrf.mxu1  ;;  %v1218_v46 = vpop.f32.mrf.mxu0 }
 0x28f   : > { %924 = vst.msk [vmem:[%s3309_s8 + $0x168] sm:$0xff] %vm879_vm1, %v864_v5  ;;  %2234 = vst.msk [vmem:[%s3309_s8 + $0x2f8] sm:$0xff] %vm879_vm1, %v1215_v16  ;;  %v868_v63 = vadd.f32 %v867_v56, %v3617_v43  ;;  %v1219_v52 = vadd.f32 %v1218_v46, %v3617_v43 }
 0x290   : > { %v869_v18 = vpop.f32.mrf.mxu1  ;;  %v1220_v58 = vpop.f32.mrf.mxu0 }
 0x291   : > { %925 = vst [vmem:[%s3309_s8 + $0x170] sm:$0xff] %v868_v63  ;;  %2235 = vst [vmem:[%s3309_s8 + $0x300] sm:$0xff] %v1219_v52  ;;  %v870_v10 = vadd.f32 %v869_v18, %v3623_v41  ;;  %v1221_v4 = vadd.f32 %v1220_v58, %v3623_v41 }
 0x292   : > { %v873_v5 = vpop.f32.mrf.mxu1  ;;  %v1224_v16 = vpop.f32.mrf.mxu0 }
 0x293   : > { %926 = vst.msk [vmem:[%s3309_s8 + $0x178] sm:$0xff] %vm879_vm1, %v870_v10  ;;  %2236 = vst.msk [vmem:[%s3309_s8 + $0x308] sm:$0xff] %vm879_vm1, %v1221_v4  ;;  %v874_v56 = vadd.f32 %v873_v5, %v3631_v20  ;;  %v1225_v46 = vadd.f32 %v1224_v16, %v3631_v20 }
 0x294   : > { %v875_v63 = vpop.f32.mrf.mxu1  ;;  %v1226_v52 = vpop.f32.mrf.mxu0 }
 0x295   : > { %927 = vst [vmem:[%s3309_s8 + $0x180] sm:$0xff] %v874_v56  ;;  %2237 = vst [vmem:[%s3309_s8 + $0x310] sm:$0xff] %v1225_v46  ;;  %v876_v18 = vadd.f32 %v875_v63, %v3637_v45  ;;  %v1227_v58 = vadd.f32 %v1226_v52, %v3637_v45  ;;  %v2503_v56 = vld [vmem:[%s4105_s2] sm:$0xff]  ;;  %v4196_v46 = vmov 0.0  }
 0x296   : > { %v1354_v41 = vpop.f32.mrf.mxu1  ;;  %v1705_v43 = vpop.f32.mrf.mxu0 }
 0x297   : > { %928 = vst.msk [vmem:[%s3309_s8 + $0x188] sm:$0xff] %vm879_vm1, %v876_v18  ;;  %2238 = vst.msk [vmem:[%s3309_s8 + $0x318] sm:$0xff] %vm879_vm1, %v1227_v58 }
 0x298   : > { %v1356_v10 = vpop.f32.mrf.mxu1  ;;  %v1707_v4 = vpop.f32.mrf.mxu0 }
 0x29a   : > { %v1360_v22 = vpop.f32.mrf.mxu1  ;;  %v1711_v5 = vpop.f32.mrf.mxu0 }
 0x29c   : > { %v1362_v61 = vpop.f32.mrf.mxu1  ;;  %v1713_v16 = vpop.f32.mrf.mxu0 }
 0x29d   : > { %1393 = vmatprep.subr.mxu1 %v1362_v61  ;;  %1744 = vmatprep.subr.mxu0 %v1713_v16  ;;  %v2504_v61 = vld [vmem:[%s4105_s2 + $0x8] sm:$0xff] }
 0x29e   : > { %1394 = vmatpush1.msra.mxu1 %v1360_v22  ;;  %1745 = vmatpush1.msra.mxu0 %v1711_v5 }
 0x29f   : > { %1395 = vmatprep.subr.mxu1 %v1356_v10  ;;  %1746 = vmatprep.subr.mxu0 %v1707_v4 }
 0x2a0   : > { %1396 = vmatpush1.msra.mxu1 %v1354_v41  ;;  %1747 = vmatpush1.msra.mxu0 %v1705_v43 }
 0x2a1   : > { %2241 = vmatmul.mubr.msk.f32.vlgmr.msra.gmra.mxu1 %vm504_vm0, %v2503_v56  ;;  %2318 = vmatmul.mubr.msk.f32.vlgmr.msra.gmra.mxu0 %vm504_vm0, %v2503_v56 }
 0x2a2   : > { %1435 = vmatprep.mubr.f32.mxu1 %v4196_v46  ;;  %1786 = vmatprep.mubr.f32.mxu0 %v4196_v46 }
 0x2a5   : > { %2242 = vmatmul.mubr.msk.f32.gmra.mxu1 %vm504_vm0, %v2504_v61  ;;  %2319 = vmatmul.mubr.msk.f32.gmra.mxu0 %vm504_vm0, %v2504_v61 }
 0x2a6   : > { %1441 = vmatprep.mubr.f32.mxu1 %v4196_v46  ;;  %1792 = vmatprep.mubr.f32.mxu0 %v4196_v46 }
 0x2a9   : > { %2243 = vmatmul.mubr.msk.f32.gmra.mxu1 %vm504_vm0, %v3030_v7  ;;  %2320 = vmatmul.mubr.msk.f32.gmra.mxu0 %vm504_vm0, %v3030_v7 }
 0x2aa   : > { %1447 = vmatprep.mubr.f32.mxu1 %v4196_v46  ;;  %1798 = vmatprep.mubr.f32.mxu0 %v4196_v46 }
 0x2ad   : > { %2244 = vmatmul.mubr.msk.f32.gmra.mxu1 %vm504_vm0, %v3045_v0  ;;  %2321 = vmatmul.mubr.msk.f32.gmra.mxu0 %vm504_vm0, %v3045_v0 }
 0x2ae   : > { %1453 = vmatprep.mubr.f32.mxu1 %v4196_v46  ;;  %1804 = vmatprep.mubr.f32.mxu0 %v4196_v46 }
 0x2b1   : > { %2245 = vmatmul.mubr.msk.f32.gmra.mxu1 %vm504_vm0, %v3056_v1  ;;  %2322 = vmatmul.mubr.msk.f32.gmra.mxu0 %vm504_vm0, %v3056_v1 }
 0x2b2   : > { %1459 = vmatprep.mubr.f32.mxu1 %v4196_v46  ;;  %1810 = vmatprep.mubr.f32.mxu0 %v4196_v46 }
 0x2b5   : > { %2246 = vmatmul.mubr.msk.f32.gmra.mxu1 %vm504_vm0, %v3067_v2  ;;  %2323 = vmatmul.mubr.msk.f32.gmra.mxu0 %vm504_vm0, %v3067_v2 }
 0x2b6   : > { %1465 = vmatprep.mubr.f32.mxu1 %v4196_v46  ;;  %1816 = vmatprep.mubr.f32.mxu0 %v4196_v46 }
 0x2b9   : > { %2247 = vmatmul.mubr.msk.f32.gmra.mxu1 %vm504_vm0, %v3078_v3  ;;  %2324 = vmatmul.mubr.msk.f32.gmra.mxu0 %vm504_vm0, %v3078_v3 }
 0x2ba   : > { %1471 = vmatprep.mubr.f32.mxu1 %v4196_v46  ;;  %1822 = vmatprep.mubr.f32.mxu0 %v4196_v46 }
 0x2bd   : > { %2248 = vmatmul.mubr.msk.f32.gmra.mxu1 %vm504_vm0, %v3089_v26  ;;  %2325 = vmatmul.mubr.msk.f32.gmra.mxu0 %vm504_vm0, %v3089_v26 }
 0x2be   : > { %1477 = vmatprep.mubr.f32.mxu1 %v4196_v46  ;;  %1828 = vmatprep.mubr.f32.mxu0 %v4196_v46 }
 0x2c1   : > { %2249 = vmatmul.mubr.msk.f32.gmra.mxu1 %vm504_vm0, %v3100_v27  ;;  %2326 = vmatmul.mubr.msk.f32.gmra.mxu0 %vm504_vm0, %v3100_v27 }
 0x2c2   : > { %1483 = vmatprep.mubr.f32.mxu1 %v4196_v46  ;;  %1834 = vmatprep.mubr.f32.mxu0 %v4196_v46 }
 0x2c5   : > { %2250 = vmatmul.mubr.msk.f32.gmra.mxu1 %vm504_vm0, %v3111_v9  ;;  %2327 = vmatmul.mubr.msk.f32.gmra.mxu0 %vm504_vm0, %v3111_v9 }
 0x2c6   : > { %1489 = vmatprep.mubr.f32.mxu1 %v4196_v46  ;;  %1840 = vmatprep.mubr.f32.mxu0 %v4196_v46 }
 0x2c9   : > { %2251 = vmatmul.mubr.msk.f32.gmra.mxu1 %vm504_vm0, %v3122_v28  ;;  %2328 = vmatmul.mubr.msk.f32.gmra.mxu0 %vm504_vm0, %v3122_v28 }
 0x2ca   : > { %1495 = vmatprep.mubr.f32.mxu1 %v4196_v46  ;;  %1846 = vmatprep.mubr.f32.mxu0 %v4196_v46 }
 0x2cd   : > { %2252 = vmatmul.mubr.msk.f32.gmra.mxu1 %vm504_vm0, %v3133_v29  ;;  %2329 = vmatmul.mubr.msk.f32.gmra.mxu0 %vm504_vm0, %v3133_v29 }
 0x2ce   : > { %1501 = vmatprep.mubr.f32.mxu1 %v4196_v46  ;;  %1852 = vmatprep.mubr.f32.mxu0 %v4196_v46 }
 0x2d1   : > { %2253 = vmatmul.mubr.msk.f32.gmra.mxu1 %vm504_vm0, %v3144_v30  ;;  %2330 = vmatmul.mubr.msk.f32.gmra.mxu0 %vm504_vm0, %v3144_v30 }
 0x2d2   : > { %1507 = vmatprep.mubr.f32.mxu1 %v4196_v46  ;;  %1858 = vmatprep.mubr.f32.mxu0 %v4196_v46 }
 0x2d5   : > { %2254 = vmatmul.mubr.msk.f32.gmra.mxu1 %vm504_vm0, %v3155_v31  ;;  %2331 = vmatmul.mubr.msk.f32.gmra.mxu0 %vm504_vm0, %v3155_v31 }
 0x2d6   : > { %1513 = vmatprep.mubr.f32.mxu1 %v4196_v46  ;;  %1864 = vmatprep.mubr.f32.mxu0 %v4196_v46 }
 0x2d9   : > { %2255 = vmatmul.mubr.msk.f32.gmra.mxu1 %vm504_vm0, %v3166_v32  ;;  %2332 = vmatmul.mubr.msk.f32.gmra.mxu0 %vm504_vm0, %v3166_v32 }
 0x2da   : > { %1519 = vmatprep.mubr.f32.mxu1 %v4196_v46  ;;  %1870 = vmatprep.mubr.f32.mxu0 %v4196_v46 }
 0x2dd   : > { %2256 = vmatmul.mubr.msk.f32.gmra.mxu1 %vm504_vm0, %v3177_v33  ;;  %2333 = vmatmul.mubr.msk.f32.gmra.mxu0 %vm504_vm0, %v3177_v33 }
 0x2de   : > { %1525 = vmatprep.mubr.f32.mxu1 %v4196_v46  ;;  %1876 = vmatprep.mubr.f32.mxu0 %v4196_v46 }
 0x2e1   : > { %2257 = vmatmul.mubr.msk.f32.gmra.mxu1 %vm504_vm0, %v3188_v12  ;;  %2334 = vmatmul.mubr.msk.f32.gmra.mxu0 %vm504_vm0, %v3188_v12 }
 0x2e2   : > { %1531 = vmatprep.mubr.f32.mxu1 %v4196_v46  ;;  %1882 = vmatprep.mubr.f32.mxu0 %v4196_v46 }
 0x2e5   : > { %2258 = vmatmul.mubr.msk.f32.gmra.mxu1 %vm504_vm0, %v3199_v34  ;;  %2335 = vmatmul.mubr.msk.f32.gmra.mxu0 %vm504_vm0, %v3199_v34 }
 0x2e6   : > { %1537 = vmatprep.mubr.f32.mxu1 %v4196_v46  ;;  %1888 = vmatprep.mubr.f32.mxu0 %v4196_v46 }
 0x2e9   : > { %2259 = vmatmul.mubr.msk.f32.gmra.mxu1 %vm504_vm0, %v3210_v35  ;;  %2336 = vmatmul.mubr.msk.f32.gmra.mxu0 %vm504_vm0, %v3210_v35 }
 0x2ea   : > { %1543 = vmatprep.mubr.f32.mxu1 %v4196_v46  ;;  %1894 = vmatprep.mubr.f32.mxu0 %v4196_v46 }
 0x2ed   : > { %2260 = vmatmul.mubr.msk.f32.gmra.mxu1 %vm504_vm0, %v3221_v36  ;;  %2337 = vmatmul.mubr.msk.f32.gmra.mxu0 %vm504_vm0, %v3221_v36 }
 0x2ee   : > { %1549 = vmatprep.mubr.f32.mxu1 %v4196_v46  ;;  %1900 = vmatprep.mubr.f32.mxu0 %v4196_v46 }
 0x2f1   : > { %2261 = vmatmul.mubr.msk.f32.gmra.mxu1 %vm504_vm0, %v3232_v37  ;;  %2338 = vmatmul.mubr.msk.f32.gmra.mxu0 %vm504_vm0, %v3232_v37 }
 0x2f2   : > { %1555 = vmatprep.mubr.f32.mxu1 %v4196_v46  ;;  %1906 = vmatprep.mubr.f32.mxu0 %v4196_v46 }
 0x2f5   : > { %2262 = vmatmul.mubr.msk.f32.gmra.mxu1 %vm504_vm0, %v3243_v6  ;;  %2339 = vmatmul.mubr.msk.f32.gmra.mxu0 %vm504_vm0, %v3243_v6 }
 0x2f6   : > { %1561 = vmatprep.mubr.f32.mxu1 %v4196_v46  ;;  %1912 = vmatprep.mubr.f32.mxu0 %v4196_v46 }
 0x2f9   : > { %2263 = vmatmul.mubr.msk.f32.gmra.mxu1 %vm504_vm0, %v3254_v38  ;;  %2340 = vmatmul.mubr.msk.f32.gmra.mxu0 %vm504_vm0, %v3254_v38 }
 0x2fa   : > { %1567 = vmatprep.mubr.f32.mxu1 %v4196_v46  ;;  %1918 = vmatprep.mubr.f32.mxu0 %v4196_v46 }
 0x2fd   : > { %2264 = vmatmul.mubr.msk.f32.gmra.mxu1 %vm504_vm0, %v3265_v8  ;;  %2341 = vmatmul.mubr.msk.f32.gmra.mxu0 %vm504_vm0, %v3265_v8 }
 0x2fe   : > { %1573 = vmatprep.mubr.f32.mxu1 %v4196_v46  ;;  %1924 = vmatprep.mubr.f32.mxu0 %v4196_v46 }
 0x301   : > { %2265 = vmatmul.mubr.msk.f32.gmra.mxu1 %vm504_vm0, %v3276_v40  ;;  %2342 = vmatmul.mubr.msk.f32.gmra.mxu0 %vm504_vm0, %v3276_v40 }
 0x361   : > { %v1431_v7 = vpop.f32.mrf.mxu1  ;;  %v1782_v0 = vpop.f32.mrf.mxu0 }
 0x362   : > { %v1432_v1 = vadd.f32 %v1431_v7, %v3301_v44  ;;  %v1783_v2 = vadd.f32 %v1782_v0, %v3301_v44 }
 0x363   : > { %v1433_v3 = vpop.f32.mrf.mxu1  ;;  %v1784_v26 = vpop.f32.mrf.mxu0 }
 0x364   : > { %2266 = vst [vmem:[%s3309_s8 + $0x320] sm:$0xff] %v1432_v1  ;;  %2343 = vst [vmem:[%s3309_s8 + $0x4b0] sm:$0xff] %v1783_v2  ;;  %v1434_v27 = vadd.f32 %v1433_v3, %v3303_v47  ;;  %v1785_v9 = vadd.f32 %v1784_v26, %v3303_v47 }
 0x365   : > { %v1437_v28 = vpop.f32.mrf.mxu1  ;;  %v1788_v29 = vpop.f32.mrf.mxu0 }
 0x366   : > { %2267 = vst.msk [vmem:[%s3309_s8 + $0x328] sm:$0xff] %vm879_vm1, %v1434_v27  ;;  %2344 = vst.msk [vmem:[%s3309_s8 + $0x4b8] sm:$0xff] %vm879_vm1, %v1785_v9  ;;  %v1438_v30 = vadd.f32 %v1437_v28, %v3307_v51  ;;  %v1789_v31 = vadd.f32 %v1788_v29, %v3307_v51 }
 0x367   : > { %v1439_v32 = vpop.f32.mrf.mxu1  ;;  %v1790_v33 = vpop.f32.mrf.mxu0 }
 0x368   : > { %2268 = vst [vmem:[%s3309_s8 + $0x330] sm:$0xff] %v1438_v30  ;;  %2345 = vst [vmem:[%s3309_s8 + $0x4c0] sm:$0xff] %v1789_v31  ;;  %v1440_v12 = vadd.f32 %v1439_v32, %v3315_v55  ;;  %v1791_v34 = vadd.f32 %v1790_v33, %v3315_v55 }
 0x369   : > { %v1443_v35 = vpop.f32.mrf.mxu1  ;;  %v1794_v36 = vpop.f32.mrf.mxu0 }
 0x36a   : > { %2269 = vst.msk [vmem:[%s3309_s8 + $0x338] sm:$0xff] %vm879_vm1, %v1440_v12  ;;  %2346 = vst.msk [vmem:[%s3309_s8 + $0x4c8] sm:$0xff] %vm879_vm1, %v1791_v34  ;;  %v1444_v37 = vadd.f32 %v1443_v35, %v3323_v60  ;;  %v1795_v6 = vadd.f32 %v1794_v36, %v3323_v60 }
 0x36b   : > { %v1445_v38 = vpop.f32.mrf.mxu1  ;;  %v1796_v8 = vpop.f32.mrf.mxu0 }
 0x36c   : > { %2270 = vst [vmem:[%s3309_s8 + $0x340] sm:$0xff] %v1444_v37  ;;  %2347 = vst [vmem:[%s3309_s8 + $0x4d0] sm:$0xff] %v1795_v6  ;;  %v1446_v40 = vadd.f32 %v1445_v38, %v3329_v13  ;;  %v1797_v44 = vadd.f32 %v1796_v8, %v3329_v13 }
 0x36d   : > { %v1449_v47 = vpop.f32.mrf.mxu1  ;;  %v1800_v51 = vpop.f32.mrf.mxu0 }
 0x36e   : > { %2271 = vst.msk [vmem:[%s3309_s8 + $0x348] sm:$0xff] %vm879_vm1, %v1446_v40  ;;  %2348 = vst.msk [vmem:[%s3309_s8 + $0x4d8] sm:$0xff] %vm879_vm1, %v1797_v44  ;;  %v1450_v55 = vadd.f32 %v1449_v47, %v3337_v19  ;;  %v1801_v60 = vadd.f32 %v1800_v51, %v3337_v19 }
 0x36f   : > { %v1451_v22 = vpop.f32.mrf.mxu1  ;;  %v1802_v43 = vpop.f32.mrf.mxu0 }
 0x370   : > { %2272 = vst [vmem:[%s3309_s8 + $0x350] sm:$0xff] %v1450_v55  ;;  %2349 = vst [vmem:[%s3309_s8 + $0x4e0] sm:$0xff] %v1801_v60  ;;  %v1452_v41 = vadd.f32 %v1451_v22, %v3343_v23  ;;  %v1803_v13 = vadd.f32 %v1802_v43, %v3343_v23 }
 0x371   : > { %v1455_v63 = vpop.f32.mrf.mxu1  ;;  %v1806_v52 = vpop.f32.mrf.mxu0 }
 0x372   : > { %2273 = vst.msk [vmem:[%s3309_s8 + $0x358] sm:$0xff] %vm879_vm1, %v1452_v41  ;;  %2350 = vst.msk [vmem:[%s3309_s8 + $0x4e8] sm:$0xff] %vm879_vm1, %v1803_v13  ;;  %v1456_v18 = vadd.f32 %v1455_v63, %v3351_v42  ;;  %v1807_v19 = vadd.f32 %v1806_v52, %v3351_v42 }
 0x373   : > { %v1457_v58 = vpop.f32.mrf.mxu1  ;;  %v1808_v10 = vpop.f32.mrf.mxu0 }
 0x374   : > { %2274 = vst [vmem:[%s3309_s8 + $0x360] sm:$0xff] %v1456_v18  ;;  %2351 = vst [vmem:[%s3309_s8 + $0x4f0] sm:$0xff] %v1807_v19  ;;  %v1458_v4 = vadd.f32 %v1457_v58, %v3357_v39  ;;  %v1809_v23 = vadd.f32 %v1808_v10, %v3357_v39 }
 0x375   : > { %v1461_v5 = vpop.f32.mrf.mxu1  ;;  %v1812_v16 = vpop.f32.mrf.mxu0 }
 0x376   : > { %2275 = vst.msk [vmem:[%s3309_s8 + $0x368] sm:$0xff] %vm879_vm1, %v1458_v4  ;;  %2352 = vst.msk [vmem:[%s3309_s8 + $0x4f8] sm:$0xff] %vm879_vm1, %v1809_v23  ;;  %v1462_v56 = vadd.f32 %v1461_v5, %v3365_v53  ;;  %v1813_v42 = vadd.f32 %v1812_v16, %v3365_v53 }
 0x377   : > { %v1463_v46 = vpop.f32.mrf.mxu1  ;;  %v1814_v61 = vpop.f32.mrf.mxu0 }
 0x378   : > { %2276 = vst [vmem:[%s3309_s8 + $0x370] sm:$0xff] %v1462_v56  ;;  %2353 = vst [vmem:[%s3309_s8 + $0x500] sm:$0xff] %v1813_v42  ;;  %v1464_v7 = vadd.f32 %v1463_v46, %v3371_v59  ;;  %v1815_v39 = vadd.f32 %v1814_v61, %v3371_v59  ;;  %v4197_v56 = vld [vmem:[#allocation15_spill] sm:$0xff] }
 0x379   : > { %v1467_v0 = vpop.f32.mrf.mxu1  ;;  %v1818_v1 = vpop.f32.mrf.mxu0 }
 0x37a   : > { %2277 = vst.msk [vmem:[%s3309_s8 + $0x378] sm:$0xff] %vm879_vm1, %v1464_v7  ;;  %2354 = vst.msk [vmem:[%s3309_s8 + $0x508] sm:$0xff] %vm879_vm1, %v1815_v39  ;;  %v1468_v2 = vadd.f32 %v1467_v0, %v3379_v14  ;;  %v1819_v53 = vadd.f32 %v1818_v1, %v3379_v14  ;;  %v4198_v7 = vld [vmem:[#allocation16_spill] sm:$0xff] }
 0x37b   : > { %v1469_v3 = vpop.f32.mrf.mxu1  ;;  %v1820_v26 = vpop.f32.mrf.mxu0 }
 0x37c   : > { %2278 = vst [vmem:[%s3309_s8 + $0x380] sm:$0xff] %v1468_v2  ;;  %2355 = vst [vmem:[%s3309_s8 + $0x510] sm:$0xff] %v1819_v53  ;;  %v1470_v27 = vadd.f32 %v1469_v3, %v3385_v21  ;;  %v1821_v59 = vadd.f32 %v1820_v26, %v3385_v21  ;;  %v4199_v2 = vld [vmem:[#allocation17_spill] sm:$0xff] }
 0x37d   : > { %v1473_v9 = vpop.f32.mrf.mxu1  ;;  %v1824_v28 = vpop.f32.mrf.mxu0 }
 0x37e   : > { %2279 = vst.msk [vmem:[%s3309_s8 + $0x388] sm:$0xff] %vm879_vm1, %v1470_v27  ;;  %2356 = vst.msk [vmem:[%s3309_s8 + $0x518] sm:$0xff] %vm879_vm1, %v1821_v59  ;;  %v1474_v29 = vadd.f32 %v1473_v9, %v3393_v11  ;;  %v1825_v14 = vadd.f32 %v1824_v28, %v3393_v11  ;;  %v4200_v59 = vld [vmem:[#allocation18_spill] sm:$0xff] }
 0x37f   : > { %v1475_v30 = vpop.f32.mrf.mxu1  ;;  %v1826_v31 = vpop.f32.mrf.mxu0 }
 0x380   : > { %2280 = vst [vmem:[%s3309_s8 + $0x390] sm:$0xff] %v1474_v29  ;;  %2357 = vst [vmem:[%s3309_s8 + $0x520] sm:$0xff] %v1825_v14  ;;  %v1476_v32 = vadd.f32 %v1475_v30, %v3399_v48  ;;  %v1827_v21 = vadd.f32 %v1826_v31, %v3399_v48  ;;  %v4201_v30 = vld [vmem:[#allocation19_spill] sm:$0xff] }
 0x381   : > { %v1479_v33 = vpop.f32.mrf.mxu1  ;;  %v1830_v12 = vpop.f32.mrf.mxu0 }
 0x382   : > { %2281 = vst.msk [vmem:[%s3309_s8 + $0x398] sm:$0xff] %vm879_vm1, %v1476_v32  ;;  %2358 = vst.msk [vmem:[%s3309_s8 + $0x528] sm:$0xff] %vm879_vm1, %v1827_v21  ;;  %v1480_v34 = vadd.f32 %v1479_v33, %v3407_v54  ;;  %v1831_v11 = vadd.f32 %v1830_v12, %v3407_v54  ;;  %v4202_v12 = vld [vmem:[#allocation20_spill] sm:$0xff] }
 0x383   : > { %v1481_v35 = vpop.f32.mrf.mxu1  ;;  %v1832_v36 = vpop.f32.mrf.mxu0 }
 0x384   : > { %2282 = vst [vmem:[%s3309_s8 + $0x3a0] sm:$0xff] %v1480_v34  ;;  %2359 = vst [vmem:[%s3309_s8 + $0x530] sm:$0xff] %v1831_v11  ;;  %v1482_v37 = vadd.f32 %v1481_v35, %v3413_v62  ;;  %v1833_v48 = vadd.f32 %v1832_v36, %v3413_v62 }
 0x385   : > { %v1485_v6 = vpop.f32.mrf.mxu1  ;;  %v1836_v38 = vpop.f32.mrf.mxu0 }
 0x386   : > { %2283 = vst.msk [vmem:[%s3309_s8 + $0x3a8] sm:$0xff] %vm879_vm1, %v1482_v37  ;;  %2360 = vst.msk [vmem:[%s3309_s8 + $0x538] sm:$0xff] %vm879_vm1, %v1833_v48  ;;  %v1486_v8 = vadd.f32 %v1485_v6, %v3421_v17  ;;  %v1837_v54 = vadd.f32 %v1836_v38, %v3421_v17  ;;  %v4203_v37 = vld [vmem:[#allocation21_spill] sm:$0xff] }
 0x387   : > { %v1487_v40 = vpop.f32.mrf.mxu1  ;;  %v1838_v44 = vpop.f32.mrf.mxu0 }
 0x388   : > { %2284 = vst [vmem:[%s3309_s8 + $0x3b0] sm:$0xff] %v1486_v8  ;;  %2361 = vst [vmem:[%s3309_s8 + $0x540] sm:$0xff] %v1837_v54  ;;  %v1488_v47 = vadd.f32 %v1487_v40, %v3427_v25  ;;  %v1839_v62 = vadd.f32 %v1838_v44, %v3427_v25  ;;  %v4204_v54 = vld [vmem:[#allocation22_spill] sm:$0xff] }
 0x389   : > { %v1491_v51 = vpop.f32.mrf.mxu1  ;;  %v1842_v55 = vpop.f32.mrf.mxu0 }
 0x38a   : > { %2285 = vst.msk [vmem:[%s3309_s8 + $0x3b8] sm:$0xff] %vm879_vm1, %v1488_v47  ;;  %2362 = vst.msk [vmem:[%s3309_s8 + $0x548] sm:$0xff] %vm879_vm1, %v1839_v62  ;;  %v1492_v60 = vadd.f32 %v1491_v51, %v3435_v49  ;;  %v1843_v17 = vadd.f32 %v1842_v55, %v3435_v49  ;;  %v4205_v51 = vld [vmem:[#allocation23_spill] sm:$0xff] }
 0x38b   : > { %v1493_v22 = vpop.f32.mrf.mxu1  ;;  %v1844_v43 = vpop.f32.mrf.mxu0 }
 0x38c   : > { %2286 = vst [vmem:[%s3309_s8 + $0x3c0] sm:$0xff] %v1492_v60  ;;  %2363 = vst [vmem:[%s3309_s8 + $0x550] sm:$0xff] %v1843_v17  ;;  %v1494_v41 = vadd.f32 %v1493_v22, %v3441_v57  ;;  %v1845_v25 = vadd.f32 %v1844_v43, %v3441_v57  ;;  %v4206_v43 = vld [vmem:[#allocation24_spill] sm:$0xff] }
 0x38d   : > { %v1497_v13 = vpop.f32.mrf.mxu1  ;;  %v1848_v63 = vpop.f32.mrf.mxu0 }
 0x38e   : > { %2287 = vst.msk [vmem:[%s3309_s8 + $0x3c8] sm:$0xff] %vm879_vm1, %v1494_v41  ;;  %2364 = vst.msk [vmem:[%s3309_s8 + $0x558] sm:$0xff] %vm879_vm1, %v1845_v25  ;;  %v1498_v52 = vadd.f32 %v1497_v13, %v3449_v15  ;;  %v1849_v49 = vadd.f32 %v1848_v63, %v3449_v15 }
 0x38f   : > { %v1499_v18 = vpop.f32.mrf.mxu1  ;;  %v1850_v19 = vpop.f32.mrf.mxu0 }
 0x390   : > { %2288 = vst [vmem:[%s3309_s8 + $0x3d0] sm:$0xff] %v1498_v52  ;;  %2365 = vst [vmem:[%s3309_s8 + $0x560] sm:$0xff] %v1849_v49  ;;  %v1500_v58 = vadd.f32 %v1499_v18, %v3455_v24  ;;  %v1851_v57 = vadd.f32 %v1850_v19, %v3455_v24  ;;  %v4207_v52 = vld [vmem:[#allocation25_spill] sm:$0xff] }
 0x391   : > { %v1503_v10 = vpop.f32.mrf.mxu1  ;;  %v1854_v4 = vpop.f32.mrf.mxu0 }
 0x392   : > { %2289 = vst.msk [vmem:[%s3309_s8 + $0x3d8] sm:$0xff] %vm879_vm1, %v1500_v58  ;;  %2366 = vst.msk [vmem:[%s3309_s8 + $0x568] sm:$0xff] %vm879_vm1, %v1851_v57  ;;  %v1504_v23 = vadd.f32 %v1503_v10, %v3463_v50  ;;  %v1855_v15 = vadd.f32 %v1854_v4, %v3463_v50  ;;  %v4208_v57 = vld [vmem:[#allocation26_spill] sm:$0xff] }
 0x393   : > { %v1505_v5 = vpop.f32.mrf.mxu1  ;;  %v1856_v16 = vpop.f32.mrf.mxu0 }
 0x394   : > { %2290 = vst [vmem:[%s3309_s8 + $0x3e0] sm:$0xff] %v1504_v23  ;;  %2367 = vst [vmem:[%s3309_s8 + $0x570] sm:$0xff] %v1855_v15  ;;  %v1506_v42 = vadd.f32 %v1505_v5, %v4197_v56  ;;  %v1857_v24 = vadd.f32 %v1856_v16, %v4197_v56  ;;  %v4209_v5 = vld [vmem:[#allocation27_spill] sm:$0xff] }
 0x395   : > { %v1509_v46 = vpop.f32.mrf.mxu1  ;;  %v1860_v61 = vpop.f32.mrf.mxu0 }
 0x396   : > { %2291 = vst.msk [vmem:[%s3309_s8 + $0x3e8] sm:$0xff] %vm879_vm1, %v1506_v42  ;;  %2368 = vst.msk [vmem:[%s3309_s8 + $0x578] sm:$0xff] %vm879_vm1, %v1857_v24  ;;  %v1510_v39 = vadd.f32 %v1509_v46, %v4198_v7  ;;  %v1861_v50 = vadd.f32 %v1860_v61, %v4198_v7  ;;  %v4210_v46 = vld [vmem:[#allocation28_spill] sm:$0xff] }
 0x397   : > { %v1511_v0 = vpop.f32.mrf.mxu1  ;;  %v1862_v1 = vpop.f32.mrf.mxu0 }
 0x398   : > { %2292 = vst [vmem:[%s3309_s8 + $0x3f0] sm:$0xff] %v1510_v39  ;;  %2369 = vst [vmem:[%s3309_s8 + $0x580] sm:$0xff] %v1861_v50  ;;  %v1512_v53 = vadd.f32 %v1511_v0, %v4199_v2  ;;  %v1863_v3 = vadd.f32 %v1862_v1, %v4199_v2  ;;  %v4211_v0 = vld [vmem:[#allocation29_spill] sm:$0xff] }
 0x399   : > { %v1515_v26 = vpop.f32.mrf.mxu1  ;;  %v1866_v27 = vpop.f32.mrf.mxu0 }
 0x39a   : > { %2293 = vst.msk [vmem:[%s3309_s8 + $0x3f8] sm:$0xff] %vm879_vm1, %v1512_v53  ;;  %2370 = vst.msk [vmem:[%s3309_s8 + $0x588] sm:$0xff] %vm879_vm1, %v1863_v3  ;;  %v1516_v9 = vadd.f32 %v1515_v26, %v4200_v59  ;;  %v1867_v28 = vadd.f32 %v1866_v27, %v4200_v59  ;;  %v4212_v26 = vld [vmem:[#allocation30_spill] sm:$0xff] }
 0x39b   : > { %v1517_v29 = vpop.f32.mrf.mxu1  ;;  %v1868_v14 = vpop.f32.mrf.mxu0 }
 0x39c   : > { %2294 = vst [vmem:[%s3309_s8 + $0x400] sm:$0xff] %v1516_v9  ;;  %2371 = vst [vmem:[%s3309_s8 + $0x590] sm:$0xff] %v1867_v28  ;;  %v1518_v31 = vadd.f32 %v1517_v29, %v4201_v30  ;;  %v1869_v32 = vadd.f32 %v1868_v14, %v4201_v30  ;;  %v4213_v29 = vld [vmem:[#allocation31_spill] sm:$0xff] }
 0x39d   : > { %v1521_v21 = vpop.f32.mrf.mxu1  ;;  %v1872_v33 = vpop.f32.mrf.mxu0 }
 0x39e   : > { %2295 = vst.msk [vmem:[%s3309_s8 + $0x408] sm:$0xff] %vm879_vm1, %v1518_v31  ;;  %2372 = vst.msk [vmem:[%s3309_s8 + $0x598] sm:$0xff] %vm879_vm1, %v1869_v32  ;;  %v1522_v34 = vadd.f32 %v1521_v21, %v4202_v12  ;;  %v1873_v11 = vadd.f32 %v1872_v33, %v4202_v12  ;;  %v4214_v21 = vld [vmem:[#allocation32_spill] sm:$0xff] }
 0x39f   : > { %v1523_v35 = vpop.f32.mrf.mxu1  ;;  %v1874_v36 = vpop.f32.mrf.mxu0 }
 0x3a0   : > { %2296 = vst [vmem:[%s3309_s8 + $0x410] sm:$0xff] %v1522_v34  ;;  %2373 = vst [vmem:[%s3309_s8 + $0x5a0] sm:$0xff] %v1873_v11  ;;  %v1524_v48 = vadd.f32 %v1523_v35, %v4203_v37  ;;  %v1875_v6 = vadd.f32 %v1874_v36, %v4203_v37  ;;  %v4215_v35 = vld [vmem:[#allocation33_spill] sm:$0xff] }
 0x3a1   : > { %v1527_v38 = vpop.f32.mrf.mxu1  ;;  %v1878_v8 = vpop.f32.mrf.mxu0 }
 0x3a2   : > { %2297 = vst.msk [vmem:[%s3309_s8 + $0x418] sm:$0xff] %vm879_vm1, %v1524_v48  ;;  %2374 = vst.msk [vmem:[%s3309_s8 + $0x5a8] sm:$0xff] %vm879_vm1, %v1875_v6  ;;  %v1528_v40 = vadd.f32 %v1527_v38, %v4204_v54  ;;  %v1879_v44 = vadd.f32 %v1878_v8, %v4204_v54  ;;  %v4216_v38 = vld [vmem:[#allocation34_spill] sm:$0xff] }
 0x3a3   : > { %v1529_v47 = vpop.f32.mrf.mxu1  ;;  %v1880_v62 = vpop.f32.mrf.mxu0 }
 0x3a4   : > { %2298 = vst [vmem:[%s3309_s8 + $0x420] sm:$0xff] %v1528_v40  ;;  %2375 = vst [vmem:[%s3309_s8 + $0x5b0] sm:$0xff] %v1879_v44  ;;  %v1530_v55 = vadd.f32 %v1529_v47, %v4205_v51  ;;  %v1881_v60 = vadd.f32 %v1880_v62, %v4205_v51  ;;  %v4217_v47 = vld [vmem:[#allocation35_spill] sm:$0xff] }
 0x3a5   : > { %v1533_v17 = vpop.f32.mrf.mxu1  ;;  %v1884_v22 = vpop.f32.mrf.mxu0 }
 0x3a6   : > { %2299 = vst.msk [vmem:[%s3309_s8 + $0x428] sm:$0xff] %vm879_vm1, %v1530_v55  ;;  %2376 = vst.msk [vmem:[%s3309_s8 + $0x5b8] sm:$0xff] %vm879_vm1, %v1881_v60  ;;  %v1534_v41 = vadd.f32 %v1533_v17, %v4206_v43  ;;  %v1885_v25 = vadd.f32 %v1884_v22, %v4206_v43  ;;  %v4218_v17 = vld [vmem:[#allocation36_spill] sm:$0xff] }
 0x3a7   : > { %v1535_v13 = vpop.f32.mrf.mxu1  ;;  %v1886_v63 = vpop.f32.mrf.mxu0 }
 0x3a8   : > { %2300 = vst [vmem:[%s3309_s8 + $0x430] sm:$0xff] %v1534_v41  ;;  %2377 = vst [vmem:[%s3309_s8 + $0x5c0] sm:$0xff] %v1885_v25  ;;  %v1536_v49 = vadd.f32 %v1535_v13, %v4207_v52  ;;  %v1887_v18 = vadd.f32 %v1886_v63, %v4207_v52  ;;  %v4219_v13 = vld [vmem:[#allocation37_spill] sm:$0xff] }
 0x3a9   : > { %v1539_v19 = vpop.f32.mrf.mxu1  ;;  %v1890_v58 = vpop.f32.mrf.mxu0 }
 0x3aa   : > { %2301 = vst.msk [vmem:[%s3309_s8 + $0x438] sm:$0xff] %vm879_vm1, %v1536_v49  ;;  %2378 = vst.msk [vmem:[%s3309_s8 + $0x5c8] sm:$0xff] %vm879_vm1, %v1887_v18  ;;  %v1540_v10 = vadd.f32 %v1539_v19, %v4208_v57  ;;  %v1891_v4 = vadd.f32 %v1890_v58, %v4208_v57 }
 0x3ab   : > { %v1541_v23 = vpop.f32.mrf.mxu1  ;;  %v1892_v15 = vpop.f32.mrf.mxu0 }
 0x3ac   : > { %2302 = vst [vmem:[%s3309_s8 + $0x440] sm:$0xff] %v1540_v10  ;;  %2379 = vst [vmem:[%s3309_s8 + $0x5d0] sm:$0xff] %v1891_v4  ;;  %v1542_v16 = vadd.f32 %v1541_v23, %v4209_v5  ;;  %v1893_v56 = vadd.f32 %v1892_v15, %v4209_v5 }
 0x3ad   : > { %v1545_v42 = vpop.f32.mrf.mxu1  ;;  %v1896_v24 = vpop.f32.mrf.mxu0 }
 0x3ae   : > { %2303 = vst.msk [vmem:[%s3309_s8 + $0x448] sm:$0xff] %vm879_vm1, %v1542_v16  ;;  %2380 = vst.msk [vmem:[%s3309_s8 + $0x5d8] sm:$0xff] %vm879_vm1, %v1893_v56  ;;  %v1546_v61 = vadd.f32 %v1545_v42, %v4210_v46  ;;  %v1897_v7 = vadd.f32 %v1896_v24, %v4210_v46 }
 0x3af   : > { %v1547_v39 = vpop.f32.mrf.mxu1  ;;  %v1898_v50 = vpop.f32.mrf.mxu0 }
 0x3b0   : > { %2304 = vst [vmem:[%s3309_s8 + $0x450] sm:$0xff] %v1546_v61  ;;  %2381 = vst [vmem:[%s3309_s8 + $0x5e0] sm:$0xff] %v1897_v7  ;;  %v1548_v1 = vadd.f32 %v1547_v39, %v4211_v0  ;;  %v1899_v2 = vadd.f32 %v1898_v50, %v4211_v0 }
 0x3b1   : > { %v1551_v53 = vpop.f32.mrf.mxu1  ;;  %v1902_v3 = vpop.f32.mrf.mxu0 }
 0x3b2   : > { %2305 = vst.msk [vmem:[%s3309_s8 + $0x458] sm:$0xff] %vm879_vm1, %v1548_v1  ;;  %2382 = vst.msk [vmem:[%s3309_s8 + $0x5e8] sm:$0xff] %vm879_vm1, %v1899_v2  ;;  %v1552_v27 = vadd.f32 %v1551_v53, %v4212_v26  ;;  %v1903_v59 = vadd.f32 %v1902_v3, %v4212_v26 }
 0x3b3   : > { %v1553_v9 = vpop.f32.mrf.mxu1  ;;  %v1904_v28 = vpop.f32.mrf.mxu0 }
 0x3b4   : > { %2306 = vst [vmem:[%s3309_s8 + $0x460] sm:$0xff] %v1552_v27  ;;  %2383 = vst [vmem:[%s3309_s8 + $0x5f0] sm:$0xff] %v1903_v59  ;;  %v1554_v14 = vadd.f32 %v1553_v9, %v4213_v29  ;;  %v1905_v30 = vadd.f32 %v1904_v28, %v4213_v29 }
 0x3b5   : > { %v1557_v31 = vpop.f32.mrf.mxu1  ;;  %v1908_v32 = vpop.f32.mrf.mxu0 }
 0x3b6   : > { %2307 = vst.msk [vmem:[%s3309_s8 + $0x468] sm:$0xff] %vm879_vm1, %v1554_v14  ;;  %2384 = vst.msk [vmem:[%s3309_s8 + $0x5f8] sm:$0xff] %vm879_vm1, %v1905_v30  ;;  %v1558_v33 = vadd.f32 %v1557_v31, %v4214_v21  ;;  %v1909_v12 = vadd.f32 %v1908_v32, %v4214_v21 }
 0x3b7   : > { %v1559_v34 = vpop.f32.mrf.mxu1  ;;  %v1910_v11 = vpop.f32.mrf.mxu0 }
 0x3b8   : > { %2308 = vst [vmem:[%s3309_s8 + $0x470] sm:$0xff] %v1558_v33  ;;  %2385 = vst [vmem:[%s3309_s8 + $0x600] sm:$0xff] %v1909_v12  ;;  %v1560_v36 = vadd.f32 %v1559_v34, %v4215_v35  ;;  %v1911_v37 = vadd.f32 %v1910_v11, %v4215_v35 }
 0x3b9   : > { %v1563_v48 = vpop.f32.mrf.mxu1  ;;  %v1914_v6 = vpop.f32.mrf.mxu0 }
 0x3ba   : > { %2309 = vst.msk [vmem:[%s3309_s8 + $0x478] sm:$0xff] %vm879_vm1, %v1560_v36  ;;  %2386 = vst.msk [vmem:[%s3309_s8 + $0x608] sm:$0xff] %vm879_vm1, %v1911_v37  ;;  %v1564_v8 = vadd.f32 %v1563_v48, %v4216_v38  ;;  %v1915_v54 = vadd.f32 %v1914_v6, %v4216_v38 }
 0x3bb   : > { %v1565_v40 = vpop.f32.mrf.mxu1  ;;  %v1916_v44 = vpop.f32.mrf.mxu0 }
 0x3bc   : > { %2310 = vst [vmem:[%s3309_s8 + $0x480] sm:$0xff] %v1564_v8  ;;  %2387 = vst [vmem:[%s3309_s8 + $0x610] sm:$0xff] %v1915_v54  ;;  %v1566_v62 = vadd.f32 %v1565_v40, %v4217_v47  ;;  %v1917_v51 = vadd.f32 %v1916_v44, %v4217_v47 }
 0x3bd   : > { %v1569_v55 = vpop.f32.mrf.mxu1  ;;  %v1920_v60 = vpop.f32.mrf.mxu0 }
 0x3be   : > { %2311 = vst.msk [vmem:[%s3309_s8 + $0x488] sm:$0xff] %vm879_vm1, %v1566_v62  ;;  %2388 = vst.msk [vmem:[%s3309_s8 + $0x618] sm:$0xff] %vm879_vm1, %v1917_v51  ;;  %v1570_v22 = vadd.f32 %v1569_v55, %v4218_v17  ;;  %v1921_v43 = vadd.f32 %v1920_v60, %v4218_v17 }
 0x3bf   : > { %v1571_v41 = vpop.f32.mrf.mxu1  ;;  %v1922_v25 = vpop.f32.mrf.mxu0 }
 0x3c0   : > { %2312 = vst [vmem:[%s3309_s8 + $0x490] sm:$0xff] %v1570_v22  ;;  %2389 = vst [vmem:[%s3309_s8 + $0x620] sm:$0xff] %v1921_v43  ;;  %v1572_v63 = vadd.f32 %v1571_v41, %v4219_v13  ;;  %v1923_v52 = vadd.f32 %v1922_v25, %v4219_v13 }
 0x3c1   : > { %v1575_v49 = vpop.f32.mrf.mxu1  ;;  %v1926_v18 = vpop.f32.mrf.mxu0 }
 0x3c2   : > { %2313 = vst.msk [vmem:[%s3309_s8 + $0x498] sm:$0xff] %vm879_vm1, %v1572_v63  ;;  %2390 = vst.msk [vmem:[%s3309_s8 + $0x628] sm:$0xff] %vm879_vm1, %v1923_v52  ;;  %v1576_v19 = vadd.f32 %v1575_v49, %v3631_v20  ;;  %v1927_v58 = vadd.f32 %v1926_v18, %v3631_v20 }
 0x3c3   : > { %v1577_v57 = vpop.f32.mrf.mxu1  ;;  %v1928_v10 = vpop.f32.mrf.mxu0 }
 0x3c4   : > { %2314 = vst [vmem:[%s3309_s8 + $0x4a0] sm:$0xff] %v1576_v19  ;;  %2391 = vst [vmem:[%s3309_s8 + $0x630] sm:$0xff] %v1927_v58  ;;  %v1578_v4 = vadd.f32 %v1577_v57, %v3637_v45  ;;  %v1929_v23 = vadd.f32 %v1928_v10, %v3637_v45 }
 0x3c6   : > { %2315 = vst.msk [vmem:[%s3309_s8 + $0x4a8] sm:$0xff] %vm879_vm1, %v1578_v4  ;;  %2392 = vst.msk [vmem:[%s3309_s8 + $0x638] sm:$0xff] %vm879_vm1, %v1929_v23 }
 0x3c7   : > { %2609 = shalt.err (!%p2606_p9)
}
 0x3c8   : > { %s2610_s7 = scalar_lea.hbm %s4050_s24, 25600  ;;  %s2614_s12 = scalar_lea.hbm %s4108_s5, 51200 }
 0x3c9   : > { %p2611_p1 = scmp.ne.s32.totalorder %s4050_s24, %s2610_s7  ;;  %p2615_p8 = scmp.lt.s32.totalorder %s4050_s24, %s4108_s5 }
 0x3ca   : > { %p2616_p5 = scmp.lt.s32.totalorder %s2614_s12, %s2610_s7 }
 0x3cb   : > { %p2612_p4 = pnand %p2611_p1, %p4220_p12 }
 0x3cc   : > { %p2617_p11 = por %p2616_p5, %p2615_p8 }
 0x3cd   : > { %p2613_p6 = pneg %p2612_p4 }
 0x3cf   : > { %p2618_p7 = pnand %p2617_p11, %p2613_p6 }
 0x3d1   : > { %2621 = shalt.err (!%p2618_p7)
}
 0x3d2   : > { %s2680_s28 = smov 256   ;;  %s2681_s22 = smov 16  }
 0x3d3   : > { %2413 = dma.vmem_to_hbm [thread:$0]  (%p4220_p12), %s4052_s10, 25600, %s4050_s24, %s1983_s26, %s2680_s28, %s2680_s28, %s2681_s22  }
 0x3d4 PF: > { %s2011_s6 = sand.u32 1, %s2656_s18   ;;  %p4221_p13 = scmp.ne.s32.totalorder %s4162_s25, 0 }
 0x3d5   : > { %p4222_p10 = scmp.ge.s32.totalorder %s2668_s21, 2  ;;  %s2012_s11 = scalar_lea.sflag [#allocation4], %s2011_s6 }
 0x3d7   : > { %p2430_p0 = pnand %p4222_p10, %p4221_p13 }
 0x3d9   : > { %p2431_p3 = pneg %p2430_p0 }
 0x3db   : > { %2651 = dma.done.wait (%p2431_p3), %s2012_s11, 25600  }
 0x3dc   : > { %2653 = vsyncadd (%p2431_p3), %s2012_s11, 4294941696  ;;  %p20_p2 = scmp.ge.s32.totalorder %s2789_s23, 4   ;;  %s4223_s18 = smov %s2660_s19 }
 0x3dd   : > { %s4224_s19 = smov %s2664_s20  ;;  %s4225_s20 = smov %s2799_s29 }
 0x3de   : > { %s4226_s21 = smov %s2789_s23  ;;  %22 = sbr.rel (!%p20_p2) target bundleno = 7 (0x7), region = 104 }
 0x3e3   :  { %2017 = vsyncpa [#allocation3], 1 }
 0x3e4   :  { %2019 = vsyncpa [#allocation3 + $0x1], 1 }
 0x3e5   :  { %2020 = vsyncpa [#allocation8], 1 }
 0x3e6   :  { %2021 = vsyncpa [#allocation4], 1 }
 0x3e7   :  { %2023 = vsyncpa [#allocation4 + $0x1], 1 }
 0x3e8   :  { %2024 = vsyncpa [#allocation5], 1 }
 0x3e9   :  { %2026 = vsyncpa [#allocation5 + $0x1], 1 }

</bundles_post_ra>
